<compile_context>
chip_gen: v6e
topology: v6e:2x2x1
jax: 0.10.0
libtpu: 0.0.40
codegen_flags: <defaults>
</compile_context>

<pallas_src>
import functools
import math

import jax
import jax.numpy as jnp
from jax.experimental import pallas as pl
from jax.experimental.pallas import tpu as pltpu

MIN_NORM = 1e-15        # hyptorch MIN_NORM
ARTANH_EPS = 1e-5       # hyptorch Artanh clamp
TANH_CLAMP = 15.0       # hyptorch tanh clamp
BALL_EPS_F32 = 4e-3     # hyptorch BALL_EPS[torch.float32]


def _round_up(x, m):
    return (x + m - 1) // m * m


def _s_tile_cap():
    """Spatial tile cap + vmem limit: bigger on 128-MiB-VMEM chips (v5e/v6e)."""
    try:
        info = pltpu.get_tpu_info()
        vmem = int(getattr(info, "vmem_capacity_bytes", 0))
        if vmem >= 96 * 1024 * 1024:
            return 2048, 64 * 1024 * 1024
    except Exception:
        pass
    return 1024, 32 * 1024 * 1024          # v7x-safe default (64 MiB physical)


# --------------------------- fused Pallas kernel ---------------------------

def _hyp_conv_kernel(x_ref, xh_ref, w_ref, b_ref, bsum_ref, bcast_ref, o_ref,
                     xstack_ref, acc_ref, *, sqrt_c, k, pitch, wout):
    """Fused logmap0 + KxK conv + bias + expmap0 + project for one
    (image n, spatial tile s, input-channel tile ci) grid step."""
    ci = pl.program_id(2)
    n_ci = pl.num_programs(2)
    ci_tile, s_tile = x_ref.shape

    # ---- P3: zero the f32 accumulator on the first contraction step ----
    @pl.when(ci == 0)
    def _init():
        acc_ref[...] = jnp.zeros_like(acc_ref)

    # ---- logmap0 over the haloed slab.  dim=-1 of NCHW == one image row ==
    # one PITCH-lane segment of the flat layout.  Row sums are one thin matmul
    # against the 0/1 segment matrix B; the per-row scale is broadcast back
    # with B^T (factored reduction, no dense block-diagonal matmul). ----
    xs = jnp.concatenate([x_ref[...], xh_ref[...]], axis=1)      # (ci_tile, x_blk) f32
    ss = jnp.dot(xs * xs, bsum_ref[...], preferred_element_type=jnp.float32)
    norm = jnp.maximum(jnp.sqrt(ss), MIN_NORM)                   # (ci_tile, nr_pad)
    z = jnp.clip(sqrt_c * norm, -1.0 + ARTANH_EPS, 1.0 - ARTANH_EPS)
    scale = 0.5 * (jnp.log(1.0 + z) - jnp.log(1.0 - z)) / (norm * sqrt_c)
    # zero-padded channels have norm==MIN_NORM -> scale is finite and they stay
    # zero, so no channel mask is needed (bias is added in f32 in the epilogue).
    xs = xs * jnp.dot(scale, bcast_ref[...], preferred_element_type=jnp.float32)

    # ---- stack the K*K shifted slabs along sublanes (single staging pass,
    # cast to the conv matmul dtype) and run ONE deep-contraction matmul
    # (K*K*ci_tile) instead of K*K shallow ones. ----
    for kh in range(k):
        for kw in range(k):
            tap = kh * k + kw
            off = kh * pitch + kw                                # static lane offset
            xstack_ref[tap * ci_tile:(tap + 1) * ci_tile, :] = (
                xs[:, off:off + s_tile].astype(xstack_ref.dtype))
    acc_ref[...] += jnp.dot(w_ref[...], xstack_ref[...],
                            preferred_element_type=jnp.float32)

    # ---- last contraction step: bias + expmap0 + project, lane-dense store ----
    @pl.when(ci == n_ci - 1)
    def _epilogue():
        u = acc_ref[...] + b_ref[...]                            # (cout_p, s_tile) f32
        # exclude garbage lanes (col % pitch >= wout) from the row norm
        lane = jax.lax.broadcasted_iota(jnp.int32, u.shape, 1)
        u2 = jnp.where((lane & (pitch - 1)) < wout, u * u, 0.0)
        un = jnp.maximum(
            jnp.sqrt(jnp.dot(u2, bsum_ref[:s_tile, :],
                             preferred_element_type=jnp.float32)),
            MIN_NORM)
        t = jnp.tanh(jnp.clip(sqrt_c * un, -TANH_CLAMP, TANH_CLAMP))
        gn = t / sqrt_c                 # ||expmap0(u)|| analytically -> no 2nd matmul
        maxnorm = (1.0 - BALL_EPS_F32) / sqrt_c
        fac = (t / (un * sqrt_c)) * jnp.where(gn > maxnorm, maxnorm / gn, 1.0)
        o_ref[...] = (u * jnp.dot(fac, bcast_ref[:, :s_tile],
                                  preferred_element_type=jnp.float32)
                      ).astype(o_ref.dtype)


# --------------------------------- wrapper ---------------------------------

def hyp_conv2_forward(x, weight, bias, c, padding, conv_dtype=jnp.bfloat16):
    """x: (N, Cin, H, W) f32 NCHW; weight: (Cout, Cin, K, K); bias: (Cout,) or None."""
    n, cin, h, w = x.shape
    cout, _, k, _ = weight.shape
    sqrt_c = float(c) ** 0.5

    hp, wp = h + 2 * padding, w + 2 * padding
    hout, wout = hp - k + 1, wp - k + 1
    kk = k * k

    # row pitch: power of two >= padded row width (image row r -> lanes [r*pitch, ...))
    pitch = 8
    while pitch < wp:
        pitch *= 2

    # channel padding / tiling (bf16 packs 16 rows per vreg, f32 packs 8)
    sub = 16 if conv_dtype == jnp.bfloat16 else 8
    cin_p = max(_round_up(cin, sub), sub)
    ci_tile = cin_p if cin_p <= 32 else 32       # bound vreg pressure per grid step
    cin_p = _round_up(cin_p, ci_tile)
    n_ci = cin_p // ci_tile
    cout_p = _round_up(cout, 8)

    # conv tap lane offsets are kh*pitch + kw; the halo width is a multiple of
    # both pitch and 128 so every row a tap touches is fully inside the slab.
    off_max = (k - 1) * pitch + (k - 1)
    off_pad = _round_up(_round_up(max(off_max, 1), pitch), 128)
    step = off_pad * pitch // math.gcd(off_pad, pitch)   # == off_pad except k==1 & pitch>128

    # flat (row-pitched) spatial tiling; bigger tiles on 128-MiB-VMEM chips
    s_out = hout * pitch
    cap, vmem_limit = _s_tile_cap()
    s_tile = min(_round_up(s_out, step), max(step, cap // step * step))
    n_s = -(-s_out // s_tile)
    s_total = n_s * s_tile
    x_blk = s_tile + off_pad
    flat = s_total + off_pad
    nr_pad = _round_up(-(-x_blk // pitch), 128)          # padded row-group count

    # ---- XLA-side re-layout of the activation (single pass) ----
    xp = jnp.zeros((n, cin_p, hp, pitch), jnp.float32)
    xp = xp.at[:, :cin, padding:padding + h, padding:padding + w].set(
        x.astype(jnp.float32))
    xf = jnp.pad(xp.reshape(n, cin_p, hp * pitch),
                 ((0, 0), (0, 0), (0, flat - hp * pitch)))

    # weights: (n_ci, Cout_p, K*K*ci_tile), tap-major along the contraction axis,
    # pre-cast to the conv matmul dtype (bf16 halves weight DMA + VMEM).
    w_pad = jnp.zeros((cout_p, cin_p, k, k), jnp.float32)
    w_pad = w_pad.at[:cout, :cin].set(weight.astype(jnp.float32))
    w_r = w_pad.reshape(cout_p, n_ci, ci_tile, k, k)
    w_r = jnp.transpose(w_r, (1, 0, 3, 4, 2)).reshape(n_ci, cout_p, kk * ci_tile)
    w_r = w_r.astype(conv_dtype)

    # exact f32 bias column (added in the epilogue)
    b_col = jnp.zeros((cout_p, 1), jnp.float32)
    if bias is not None:
        b_col = b_col.at[:cout, 0].set(bias.astype(jnp.float32))

    # factored 0/1 segment matrices: B (sum) and B^T (broadcast)
    rows = jnp.arange(x_blk, dtype=jnp.int32) // pitch
    bsum = (rows[:, None] == jnp.arange(nr_pad, dtype=jnp.int32)[None, :]
            ).astype(jnp.float32)                        # (x_blk, nr_pad)
    bcast = bsum.T                                       # (nr_pad, x_blk)

    kernel = functools.partial(_hyp_conv_kernel, sqrt_c=sqrt_c, k=k,
                               pitch=pitch, wout=wout)

    out_wide = pl.pallas_call(
        kernel,
        out_shape=jax.ShapeDtypeStruct((n, cout_p, s_total), jnp.float32),
        grid=(n, n_s, n_ci),
        in_specs=[
            # main activation slab for this (image, spatial tile, channel tile)
            pl.BlockSpec((None, ci_tile, s_tile), lambda b, s, ci: (b, ci, s)),
            # halo (next off_pad lanes) so every tap offset stays in-slab
            # (re-DMAs off_pad/s_tile extra activation bytes; acceptable at
            #  these tile sizes, could be removed with an element-offset window)
            pl.BlockSpec((None, ci_tile, off_pad),
                         lambda b, s, ci: (b, ci, (s + 1) * (s_tile // off_pad))),
            # stacked-tap weight block for this channel tile
            pl.BlockSpec((None, cout_p, kk * ci_tile), lambda b, s, ci: (ci, 0, 0)),
            # f32 bias column
            pl.BlockSpec((cout_p, 1), lambda b, s, ci: (0, 0)),
            # factored segment matrices (constant block index -> fetched once)
            pl.BlockSpec((x_blk, nr_pad), lambda b, s, ci: (0, 0)),
            pl.BlockSpec((nr_pad, x_blk), lambda b, s, ci: (0, 0)),
        ],
        out_specs=pl.BlockSpec((None, cout_p, s_tile), lambda b, s, ci: (b, 0, s)),
        scratch_shapes=[
            pltpu.VMEM((kk * ci_tile, s_tile), conv_dtype),  # stacked conv taps
            pltpu.VMEM((cout_p, s_tile), jnp.float32),       # f32 conv accumulator
        ],
        compiler_params=pltpu.CompilerParams(
            dimension_semantics=("parallel", "parallel", "arbitrary"),
            vmem_limit_bytes=vmem_limit),
    )(xf, xf, w_r, b_col, bsum, bcast)

    # crop the row-pitched output (garbage lanes/rows) back to NCHW
    out = out_wide[:, :cout, :hout * pitch]
    out = out.reshape(n, cout, hout, pitch)[..., :wout]
    return out


# ---------------- pure-JAX reference (for correctness check) ----------------

def ref_forward(x, weight, bias, c, padding):
    sqrt_c = float(c) ** 0.5
    norm = jnp.maximum(jnp.linalg.norm(x, axis=-1, keepdims=True), MIN_NORM)
    z = jnp.clip(sqrt_c * norm, -1.0 + ARTANH_EPS, 1.0 - ARTANH_EPS)
    x_eucl = x / norm / sqrt_c * 0.5 * (jnp.log(1.0 + z) - jnp.log(1.0 - z))
    out = jax.lax.conv_general_dilated(
        x_eucl, weight, window_strides=(1, 1),
        padding=[(padding, padding), (padding, padding)],
        dimension_numbers=("NCHW", "OIHW", "NCHW"),
        precision=jax.lax.Precision.HIGHEST,
    ) + bias.reshape(1, -1, 1, 1)
    un = jnp.maximum(jnp.linalg.norm(out, axis=-1, keepdims=True), MIN_NORM)
    gamma = jnp.tanh(jnp.clip(sqrt_c * un, -TANH_CLAMP, TANH_CLAMP)) * out / (un * sqrt_c)
    gn = jnp.maximum(jnp.linalg.norm(gamma, axis=-1, keepdims=True), MIN_NORM)
    maxnorm = (1.0 - BALL_EPS_F32) / sqrt_c
    return jnp.where(gn > maxnorm, gamma / gn * maxnorm, gamma)


if __name__ == "__main__":
    # small shapes consistent with the module
    N, Cin, H, W = 2, 4, 16, 16
    Cout, K, padding, c = 8, 3, 1, 1.0

    key = jax.random.PRNGKey(0)
    kx, kwt, kb = jax.random.split(key, 3)

    # input on the Poincare ball (small norm along the last dim)
    x = 0.05 * jax.random.normal(kx, (N, Cin, H, W), dtype=jnp.float32)

    # deterministic Conv2d-style init: uniform(-1/sqrt(fan_in), 1/sqrt(fan_in))
    fan_in = Cin * K * K
    bound = 1.0 / (fan_in ** 0.5)
    weight = jax.random.uniform(kwt, (Cout, Cin, K, K), jnp.float32, -bound, bound)
    bias = jax.random.uniform(kb, (Cout,), jnp.float32, -bound, bound)

    y = hyp_conv2_forward(x, weight, bias, c, padding)
    jax.block_until_ready(y)

    y_ref = ref_forward(x, weight, bias, c, padding)
    assert y.shape == (N, Cout, H, W)
    max_err = float(jnp.max(jnp.abs(y - y_ref)))
    # bf16 conv-matmul operands (per perf review) -> tolerance relaxed vs the
    # f32 reference conv; hyperbolic maps / norm reductions / accumulation are f32.
    assert max_err < 2e-3, f"mismatch vs JAX reference (max abs err {max_err:.3e})"

    print("KERNEL_OK")
</pallas_src>

<mosaic_0001>
module attributes {stable_mosaic.version = 11 : i64} {
  func.func @_hyp_conv_kernel(%arg0: i32, %arg1: i32, %arg2: i32, %arg3: memref<1x16x512xf32, #tpu.memory_space<vmem>>, %arg4: memref<1x16x128xf32, #tpu.memory_space<vmem>>, %arg5: memref<1x8x144xbf16, #tpu.memory_space<vmem>>, %arg6: memref<8x1xf32, #tpu.memory_space<vmem>>, %arg7: memref<640x128xf32, #tpu.memory_space<vmem>>, %arg8: memref<128x640xf32, #tpu.memory_space<vmem>>, %arg9: memref<1x8x512xf32, #tpu.memory_space<vmem>>, %arg10: memref<144x512xbf16, #tpu.memory_space<vmem>>, %arg11: memref<8x512xf32, #tpu.memory_space<vmem>>) attributes {dimension_semantics = [#tpu.dimension_semantics<parallel>, #tpu.dimension_semantics<parallel>, #tpu.dimension_semantics<arbitrary>], iteration_bounds = array<i64: 2, 1, 1>, scalar_prefetch = 0 : i64, scratch_operands = 2 : i64, tpu.core_type = #tpu.core_type<tc>, window_params = [{transform_indices = @transform_0, window_bounds = array<i64: 1, 16, 512>}, {transform_indices = @transform_1, window_bounds = array<i64: 1, 16, 128>}, {transform_indices = @transform_2, window_bounds = array<i64: 1, 8, 144>}, {pipeline_mode = #tpu.pipeline_mode<synchronous>, transform_indices = @transform_3, window_bounds = array<i64: 8, 1>}, {pipeline_mode = #tpu.pipeline_mode<synchronous>, transform_indices = @transform_4, window_bounds = array<i64: 640, 128>}, {pipeline_mode = #tpu.pipeline_mode<synchronous>, transform_indices = @transform_5, window_bounds = array<i64: 128, 640>}, {transform_indices = @transform_6, window_bounds = array<i64: 1, 8, 512>}]} {
    %c0_i32 = arith.constant 0 : i32
    %0 = arith.cmpi eq, %arg2, %c0_i32 : i32
    %1 = arith.extui %0 : i1 to i32
    %c0_i32_0 = arith.constant 0 : i32
    %2 = arith.cmpi ne, %1, %c0_i32_0 : i32
    scf.if %2 {
      %cst_41 = arith.constant 0.000000e+00 : f32
      %72 = vector.broadcast %cst_41 : f32 to vector<8x512xf32>
      %c0_42 = arith.constant 0 : index
      %c0_43 = arith.constant 0 : index
      %73 = vector.load %arg11[%c0_42, %c0_43] : memref<8x512xf32, #tpu.memory_space<vmem>>, vector<8x512xf32>
      tpu.vector_store %arg11[%c0_42, %c0_43], %72 {strides = array<i32>} : memref<8x512xf32, #tpu.memory_space<vmem>>, vector<8x512xf32>,
    } else {
    }
    %c0 = arith.constant 0 : index
    %c0_1 = arith.constant 0 : index
    %c0_2 = arith.constant 0 : index
    %3 = vector.load %arg3[%c0, %c0_1, %c0_2] : memref<1x16x512xf32, #tpu.memory_space<vmem>>, vector<1x16x512xf32>
    %4 = vector.shape_cast %3 : vector<1x16x512xf32> to vector<16x512xf32>
    %c0_3 = arith.constant 0 : index
    %c0_4 = arith.constant 0 : index
    %c0_5 = arith.constant 0 : index
    %5 = vector.load %arg4[%c0_3, %c0_4, %c0_5] : memref<1x16x128xf32, #tpu.memory_space<vmem>>, vector<1x16x128xf32>
    %6 = vector.shape_cast %5 : vector<1x16x128xf32> to vector<16x128xf32>
    %7 = tpu.concatenate %4, %6 in 1 : vector<16x512xf32>, vector<16x128xf32> -> vector<16x640xf32>
    %8 = arith.mulf %7, %7 : vector<16x640xf32>
    %c0_6 = arith.constant 0 : index
    %c0_7 = arith.constant 0 : index
    %9 = vector.load %arg7[%c0_6, %c0_7] : memref<640x128xf32, #tpu.memory_space<vmem>>, vector<640x128xf32>
    %cst = arith.constant dense<0.000000e+00> : vector<16x128xf32>
    %10 = tpu.matmul %8, %9, %cst {dimension_numbers = #tpu.dot_dimension_numbers<[1], [0], [0], [1], [0, 0, 1, 1], [], []>} : vector<16x640xf32>, vector<640x128xf32>, vector<16x128xf32> -> vector<16x128xf32>
    %11 = math.sqrt %10 : vector<16x128xf32>
    %cst_8 = arith.constant 1.000000e-15 : f32
    %12 = vector.broadcast %cst_8 : f32 to vector<16x128xf32>
    %13 = arith.maximumf %11, %12 : vector<16x128xf32>
    %cst_9 = arith.constant 1.000000e+00 : f32
    %14 = vector.broadcast %cst_9 : f32 to vector<16x128xf32>
    %15 = arith.mulf %14, %13 : vector<16x128xf32>
    %cst_10 = arith.constant -0.999989986 : f32
    %cst_11 = arith.constant 0.999989986 : f32
    %16 = vector.broadcast %cst_10 : f32 to vector<16x128xf32>
    %17 = arith.maximumf %16, %15 : vector<16x128xf32>
    %18 = vector.broadcast %cst_11 : f32 to vector<16x128xf32>
    %19 = arith.minimumf %18, %17 : vector<16x128xf32>
    %cst_12 = arith.constant 1.000000e+00 : f32
    %20 = vector.broadcast %cst_12 : f32 to vector<16x128xf32>
    %21 = arith.addf %20, %19 : vector<16x128xf32>
    %22 = math.log %21 : vector<16x128xf32>
    %cst_13 = arith.constant 1.000000e+00 : f32
    %23 = vector.broadcast %cst_13 : f32 to vector<16x128xf32>
    %24 = arith.subf %23, %19 : vector<16x128xf32>
    %25 = math.log %24 : vector<16x128xf32>
    %26 = arith.subf %22, %25 : vector<16x128xf32>
    %cst_14 = arith.constant 5.000000e-01 : f32
    %27 = vector.broadcast %cst_14 : f32 to vector<16x128xf32>
    %28 = arith.mulf %27, %26 : vector<16x128xf32>
    %cst_15 = arith.constant 1.000000e+00 : f32
    %29 = vector.broadcast %cst_15 : f32 to vector<16x128xf32>
    %30 = arith.mulf %13, %29 : vector<16x128xf32>
    %31 = arith.divf %28, %30 : vector<16x128xf32>
    %c0_16 = arith.constant 0 : index
    %c0_17 = arith.constant 0 : index
    %32 = vector.load %arg8[%c0_16, %c0_17] : memref<128x640xf32, #tpu.memory_space<vmem>>, vector<128x640xf32>
    %cst_18 = arith.constant dense<0.000000e+00> : vector<16x640xf32>
    %33 = tpu.matmul %31, %32, %cst_18 {dimension_numbers = #tpu.dot_dimension_numbers<[1], [0], [0], [1], [0, 0, 1, 1], [], []>} : vector<16x128xf32>, vector<128x640xf32>, vector<16x640xf32> -> vector<16x640xf32>
    %34 = arith.mulf %7, %33 : vector<16x640xf32>
    %35 = vector.extract_strided_slice %34 {offsets = [0, 0], sizes = [16, 512], strides = [1, 1]} : vector<16x640xf32> to vector<16x512xf32>
    %36 = arith.truncf %35 : vector<16x512xf32> to vector<16x512xbf16>
    %c0_19 = arith.constant 0 : index
    %c0_20 = arith.constant 0 : index
    %37 = vector.load %arg10[%c0_19, %c0_20] : memref<144x512xbf16, #tpu.memory_space<vmem>>, vector<16x512xbf16>
    tpu.vector_store %arg10[%c0_19, %c0_20], %36 {strides = array<i32>} : memref<144x512xbf16, #tpu.memory_space<vmem>>, vector<16x512xbf16>,
    %38 = vector.extract_strided_slice %34 {offsets = [0, 1], sizes = [16, 512], strides = [1, 1]} : vector<16x640xf32> to vector<16x512xf32>
    %39 = arith.truncf %38 : vector<16x512xf32> to vector<16x512xbf16>
    %c16 = arith.constant 16 : index
    %c0_21 = arith.constant 0 : index
    %40 = vector.load %arg10[%c16, %c0_21] : memref<144x512xbf16, #tpu.memory_space<vmem>>, vector<16x512xbf16>
    tpu.vector_store %arg10[%c16, %c0_21], %39 {strides = array<i32>} : memref<144x512xbf16, #tpu.memory_space<vmem>>, vector<16x512xbf16>,
    %41 = vector.extract_strided_slice %34 {offsets = [0, 2], sizes = [16, 512], strides = [1, 1]} : vector<16x640xf32> to vector<16x512xf32>
    %42 = arith.truncf %41 : vector<16x512xf32> to vector<16x512xbf16>
    %c32 = arith.constant 32 : index
    %c0_22 = arith.constant 0 : index
    %43 = vector.load %arg10[%c32, %c0_22] : memref<144x512xbf16, #tpu.memory_space<vmem>>, vector<16x512xbf16>
    tpu.vector_store %arg10[%c32, %c0_22], %42 {strides = array<i32>} : memref<144x512xbf16, #tpu.memory_space<vmem>>, vector<16x512xbf16>,
    %44 = vector.extract_strided_slice %34 {offsets = [0, 32], sizes = [16, 512], strides = [1, 1]} : vector<16x640xf32> to vector<16x512xf32>
    %45 = arith.truncf %44 : vector<16x512xf32> to vector<16x512xbf16>
    %c48 = arith.constant 48 : index
    %c0_23 = arith.constant 0 : index
    %46 = vector.load %arg10[%c48, %c0_23] : memref<144x512xbf16, #tpu.memory_space<vmem>>, vector<16x512xbf16>
    tpu.vector_store %arg10[%c48, %c0_23], %45 {strides = array<i32>} : memref<144x512xbf16, #tpu.memory_space<vmem>>, vector<16x512xbf16>,
    %47 = vector.extract_strided_slice %34 {offsets = [0, 33], sizes = [16, 512], strides = [1, 1]} : vector<16x640xf32> to vector<16x512xf32>
    %48 = arith.truncf %47 : vector<16x512xf32> to vector<16x512xbf16>
    %c64 = arith.constant 64 : index
    %c0_24 = arith.constant 0 : index
    %49 = vector.load %arg10[%c64, %c0_24] : memref<144x512xbf16, #tpu.memory_space<vmem>>, vector<16x512xbf16>
    tpu.vector_store %arg10[%c64, %c0_24], %48 {strides = array<i32>} : memref<144x512xbf16, #tpu.memory_space<vmem>>, vector<16x512xbf16>,
    %50 = vector.extract_strided_slice %34 {offsets = [0, 34], sizes = [16, 512], strides = [1, 1]} : vector<16x640xf32> to vector<16x512xf32>
    %51 = arith.truncf %50 : vector<16x512xf32> to vector<16x512xbf16>
    %c80 = arith.constant 80 : index
    %c0_25 = arith.constant 0 : index
    %52 = vector.load %arg10[%c80, %c0_25] : memref<144x512xbf16, #tpu.memory_space<vmem>>, vector<16x512xbf16>
    tpu.vector_store %arg10[%c80, %c0_25], %51 {strides = array<i32>} : memref<144x512xbf16, #tpu.memory_space<vmem>>, vector<16x512xbf16>,
    %53 = vector.extract_strided_slice %34 {offsets = [0, 64], sizes = [16, 512], strides = [1, 1]} : vector<16x640xf32> to vector<16x512xf32>
    %54 = arith.truncf %53 : vector<16x512xf32> to vector<16x512xbf16>
    %c96 = arith.constant 96 : index
    %c0_26 = arith.constant 0 : index
    %55 = vector.load %arg10[%c96, %c0_26] : memref<144x512xbf16, #tpu.memory_space<vmem>>, vector<16x512xbf16>
    tpu.vector_store %arg10[%c96, %c0_26], %54 {strides = array<i32>} : memref<144x512xbf16, #tpu.memory_space<vmem>>, vector<16x512xbf16>,
    %56 = vector.extract_strided_slice %34 {offsets = [0, 65], sizes = [16, 512], strides = [1, 1]} : vector<16x640xf32> to vector<16x512xf32>
    %57 = arith.truncf %56 : vector<16x512xf32> to vector<16x512xbf16>
    %c112 = arith.constant 112 : index
    %c0_27 = arith.constant 0 : index
    %58 = vector.load %arg10[%c112, %c0_27] : memref<144x512xbf16, #tpu.memory_space<vmem>>, vector<16x512xbf16>
    tpu.vector_store %arg10[%c112, %c0_27], %57 {strides = array<i32>} : memref<144x512xbf16, #tpu.memory_space<vmem>>, vector<16x512xbf16>,
    %59 = vector.extract_strided_slice %34 {offsets = [0, 66], sizes = [16, 512], strides = [1, 1]} : vector<16x640xf32> to vector<16x512xf32>
    %60 = arith.truncf %59 : vector<16x512xf32> to vector<16x512xbf16>
    %c128 = arith.constant 128 : index
    %c0_28 = arith.constant 0 : index
    %61 = vector.load %arg10[%c128, %c0_28] : memref<144x512xbf16, #tpu.memory_space<vmem>>, vector<16x512xbf16>
    tpu.vector_store %arg10[%c128, %c0_28], %60 {strides = array<i32>} : memref<144x512xbf16, #tpu.memory_space<vmem>>, vector<16x512xbf16>,
    %c0_29 = arith.constant 0 : index
    %c0_30 = arith.constant 0 : index
    %62 = vector.load %arg11[%c0_29, %c0_30] : memref<8x512xf32, #tpu.memory_space<vmem>>, vector<8x512xf32>
    %c0_31 = arith.constant 0 : index
    %c0_32 = arith.constant 0 : index
    %c0_33 = arith.constant 0 : index
    %63 = vector.load %arg5[%c0_31, %c0_32, %c0_33] : memref<1x8x144xbf16, #tpu.memory_space<vmem>>, vector<1x8x144xbf16>
    %64 = vector.shape_cast %63 : vector<1x8x144xbf16> to vector<8x144xbf16>
    %c0_34 = arith.constant 0 : index
    %c0_35 = arith.constant 0 : index
    %65 = vector.load %arg10[%c0_34, %c0_35] : memref<144x512xbf16, #tpu.memory_space<vmem>>, vector<144x512xbf16>
    %cst_36 = arith.constant dense<0.000000e+00> : vector<8x512xf32>
    %66 = tpu.matmul %64, %65, %cst_36 {dimension_numbers = #tpu.dot_dimension_numbers<[1], [0], [0], [1], [0, 0, 1, 1], [], []>} : vector<8x144xbf16>, vector<144x512xbf16>, vector<8x512xf32> -> vector<8x512xf32>
    %67 = arith.addf %62, %66 : vector<8x512xf32>
    %c0_37 = arith.constant 0 : index
    %c0_38 = arith.constant 0 : index
    %68 = vector.load %arg11[%c0_37, %c0_38] : memref<8x512xf32, #tpu.memory_space<vmem>>, vector<8x512xf32>
    tpu.vector_store %arg11[%c0_37, %c0_38], %67 {strides = array<i32>} : memref<8x512xf32, #tpu.memory_space<vmem>>, vector<8x512xf32>,
    %c0_i32_39 = arith.constant 0 : i32
    %69 = arith.cmpi eq, %arg2, %c0_i32_39 : i32
    %70 = arith.extui %69 : i1 to i32
    %c0_i32_40 = arith.constant 0 : i32
    %71 = arith.cmpi ne, %70, %c0_i32_40 : i32
    scf.if %71 {
      %c0_41 = arith.constant 0 : index
      %c0_42 = arith.constant 0 : index
      %72 = vector.load %arg11[%c0_41, %c0_42] : memref<8x512xf32, #tpu.memory_space<vmem>>, vector<8x512xf32>
      %c0_43 = arith.constant 0 : index
      %c0_44 = arith.constant 0 : index
      %73 = vector.load %arg6[%c0_43, %c0_44] : memref<8x1xf32, #tpu.memory_space<vmem>>, vector<8x1xf32>
      %74 = vector.broadcast %73 : vector<8x1xf32> to vector<8x512xf32>
      %75 = arith.addf %72, %74 : vector<8x512xf32>
      %76 = tpu.iota {dimensions = array<i32: 1>} : vector<8x512xi32>
      %c31_i32 = arith.constant 31 : i32
      %77 = vector.broadcast %c31_i32 : i32 to vector<8x512xi32>
      %78 = arith.andi %76, %77 : vector<8x512xi32>
      %c16_i32 = arith.constant 16 : i32
      %79 = vector.broadcast %c16_i32 : i32 to vector<8x512xi32>
      %80 = arith.cmpi slt, %78, %79 : vector<8x512xi32>
      %81 = arith.mulf %75, %75 : vector<8x512xf32>
      %cst_45 = arith.constant 0.000000e+00 : f32
      %82 = vector.broadcast %cst_45 : f32 to vector<8x512xf32>
      %83 = arith.select %80, %81, %82 : vector<8x512xi1>, vector<8x512xf32>
      %c0_46 = arith.constant 0 : index
      %c0_47 = arith.constant 0 : index
      %84 = vector.load %arg7[%c0_46, %c0_47] : memref<640x128xf32, #tpu.memory_space<vmem>>, vector<512x128xf32>
      %cst_48 = arith.constant dense<0.000000e+00> : vector<8x128xf32>
      %85 = tpu.matmul %83, %84, %cst_48 {dimension_numbers = #tpu.dot_dimension_numbers<[1], [0], [0], [1], [0, 0, 1, 1], [], []>} : vector<8x512xf32>, vector<512x128xf32>, vector<8x128xf32> -> vector<8x128xf32>
      %86 = math.sqrt %85 : vector<8x128xf32>
      %cst_49 = arith.constant 1.000000e-15 : f32
      %87 = vector.broadcast %cst_49 : f32 to vector<8x128xf32>
      %88 = arith.maximumf %86, %87 : vector<8x128xf32>
      %cst_50 = arith.constant 1.000000e+00 : f32
      %89 = vector.broadcast %cst_50 : f32 to vector<8x128xf32>
      %90 = arith.mulf %89, %88 : vector<8x128xf32>
      %cst_51 = arith.constant -1.500000e+01 : f32
      %cst_52 = arith.constant 1.500000e+01 : f32
      %91 = vector.broadcast %cst_51 : f32 to vector<8x128xf32>
      %92 = arith.maximumf %91, %90 : vector<8x128xf32>
      %93 = vector.broadcast %cst_52 : f32 to vector<8x128xf32>
      %94 = arith.minimumf %93, %92 : vector<8x128xf32>
      %95 = math.tanh %94 : vector<8x128xf32>
      %cst_53 = arith.constant 1.000000e+00 : f32
      %96 = vector.broadcast %cst_53 : f32 to vector<8x128xf32>
      %97 = arith.divf %95, %96 : vector<8x128xf32>
      %cst_54 = arith.constant 1.000000e+00 : f32
      %98 = vector.broadcast %cst_54 : f32 to vector<8x128xf32>
      %99 = arith.mulf %88, %98 : vector<8x128xf32>
      %100 = arith.divf %95, %99 : vector<8x128xf32>
      %cst_55 = arith.constant 0.995999991 : f32
      %101 = vector.broadcast %cst_55 : f32 to vector<8x128xf32>
      %102 = arith.cmpf ogt, %97, %101 : vector<8x128xf32>
      %cst_56 = arith.constant 0.995999991 : f32
      %103 = vector.broadcast %cst_56 : f32 to vector<8x128xf32>
      %104 = arith.divf %103, %97 : vector<8x128xf32>
      %cst_57 = arith.constant 1.000000e+00 : f32
      %105 = vector.broadcast %cst_57 : f32 to vector<8x128xf32>
      %106 = arith.select %102, %104, %105 : vector<8x128xi1>, vector<8x128xf32>
      %107 = arith.mulf %100, %106 : vector<8x128xf32>
      %c0_58 = arith.constant 0 : index
      %c0_59 = arith.constant 0 : index
      %108 = vector.load %arg8[%c0_58, %c0_59] : memref<128x640xf32, #tpu.memory_space<vmem>>, vector<128x512xf32>
      %cst_60 = arith.constant dense<0.000000e+00> : vector<8x512xf32>
      %109 = tpu.matmul %107, %108, %cst_60 {dimension_numbers = #tpu.dot_dimension_numbers<[1], [0], [0], [1], [0, 0, 1, 1], [], []>} : vector<8x128xf32>, vector<128x512xf32>, vector<8x512xf32> -> vector<8x512xf32>
      %110 = arith.mulf %75, %109 : vector<8x512xf32>
      %c0_61 = arith.constant 0 : index
      %c0_62 = arith.constant 0 : index
      %c0_63 = arith.constant 0 : index
      %111 = vector.load %arg9[%c0_61, %c0_62, %c0_63] : memref<1x8x512xf32, #tpu.memory_space<vmem>>, vector<1x8x512xf32>
      %112 = vector.shape_cast %111 : vector<1x8x512xf32> to vector<8x512xf32>
      %113 = vector.shape_cast %110 : vector<8x512xf32> to vector<1x8x512xf32>
      tpu.vector_store %arg9[%c0_61, %c0_62, %c0_63], %113 {strides = array<i32>} : memref<1x8x512xf32, #tpu.memory_space<vmem>>, vector<1x8x512xf32>,
    } else {
    }
    return
  }
  func.func @transform_0(%arg0: i32, %arg1: i32, %arg2: i32) -> (i32, i32, i32) {
    %c0_i32 = arith.constant 0 : i32
    return %arg0, %arg2, %arg1 : i32, i32, i32
  }
  func.func @transform_1(%arg0: i32, %arg1: i32, %arg2: i32) -> (i32, i32, i32) {
    %c1_i32 = arith.constant 1 : i32
    %0 = arith.addi %arg1, %c1_i32 : i32
    %c4_i32 = arith.constant 4 : i32
    %1 = arith.muli %0, %c4_i32 : i32
    %c0_i32 = arith.constant 0 : i32
    return %arg0, %arg2, %1 : i32, i32, i32
  }
  func.func @transform_2(%arg0: i32, %arg1: i32, %arg2: i32) -> (i32, i32, i32) {
    %c0_i32 = arith.constant 0 : i32
    %c0_i32_0 = arith.constant 0 : i32
    %c0_i32_1 = arith.constant 0 : i32
    return %arg2, %c0_i32, %c0_i32_0 : i32, i32, i32
  }
  func.func @transform_3(%arg0: i32, %arg1: i32, %arg2: i32) -> (i32, i32) {
    %c0_i32 = arith.constant 0 : i32
    %c0_i32_0 = arith.constant 0 : i32
    %c0_i32_1 = arith.constant 0 : i32
    return %c0_i32, %c0_i32_0 : i32, i32
  }
  func.func @transform_4(%arg0: i32, %arg1: i32, %arg2: i32) -> (i32, i32) {
    %c0_i32 = arith.constant 0 : i32
    %c0_i32_0 = arith.constant 0 : i32
    %c0_i32_1 = arith.constant 0 : i32
    return %c0_i32, %c0_i32_0 : i32, i32
  }
  func.func @transform_5(%arg0: i32, %arg1: i32, %arg2: i32) -> (i32, i32) {
    %c0_i32 = arith.constant 0 : i32
    %c0_i32_0 = arith.constant 0 : i32
    %c0_i32_1 = arith.constant 0 : i32
    return %c0_i32, %c0_i32_0 : i32, i32
  }
  func.func @transform_6(%arg0: i32, %arg1: i32, %arg2: i32) -> (i32, i32, i32) {
    %c0_i32 = arith.constant 0 : i32
    %c0_i32_0 = arith.constant 0 : i32
    return %arg0, %c0_i32, %arg1 : i32, i32, i32
  }
}

</mosaic_0001>

<bundles_post_ra>
// kernel: tpu_custom_call.1
= control target key start
LH: loop header
LB: loop body
LE: loop exit
PB: predicated region body
PF: predicated region fallthrough
CT: control target
= control target key end

     0   :  { %s3724_s0 = inlined_call_operand.hbm [shape: f32[2,16,640], index: 0, kind: input, shape index: {}]   ;;  %s3725_s1 = inlined_call_operand.hbm [shape: f32[2,16,640], index: 1, kind: input, shape index: {}]   ;;  %s3726_s2 = inlined_call_operand.vmem [shape: bf16[1,8,144], index: 2, kind: input, shape index: {}]   ;;  %s3727_s3 = inlined_call_operand.vmem [shape: f32[8,1], index: 3, kind: input, shape index: {}]   ;;  %s3728_s4 = inlined_call_operand.hbm [shape: f32[640,128], index: 4, kind: input, shape index: {}]   ;;  %s3729_s5 = inlined_call_operand.hbm [shape: f32[128,640], index: 5, kind: input, shape index: {}]   ;;  %s3730_s6 = inlined_call_operand.hbm [shape: f32[2,8,512], index: 6, kind: output, shape index: {}]  }
   0x1   :  { %3744 = sst [smem:[#allocation23_spill]] %s3724_s0 }
   0x2   :  { %3745 = sst [smem:[#allocation24_spill]] %s3727_s3 }
   0x3   :  { %3746 = sst [smem:[#allocation25_spill]] %s3728_s4 }
   0x4   :  { %3747 = sst [smem:[#allocation26_spill]] %s3729_s5 }
   0x5   :  { %3748 = sst [smem:[#allocation27_spill]] %s3730_s6 }
   0x6   :  { %11 = vsyncpa [#allocation5], 0 }
   0x7   :  { %13 = vsyncpa [#allocation5 + $0x1], 0 }
   0x8   :  { %14 = vsyncpa [#allocation8], 0 }
   0x9   :  { %16 = vsyncpa [#allocation8 + $0x1], 0 }
   0xa   :  { %17 = vsyncpa [#allocation11], 0 }
   0xb   :  { %18 = vsyncpa [#allocation6], 0 }
   0xc   :  { %20 = vsyncpa [#allocation6 + $0x1], 0  ;;  %s3121_s21 = smov 0   ;;  %s3123_s22 = smov 0  }
   0xd   :  { %s3125_s23 = smov 0   ;;  %s3127_s24 = smov 0  }
   0xe   :  { %s3129_s25 = smov 0   ;;  %s3131_s26 = smov 0  }
   0xf LB: > { %3749 = sst [smem:[#allocation18_spill]] %s3043_s21  ;;  %s3152_s27 = sadd.s32 4294967295, %s3063_s26   ;;  %s3063_s26 = sphi %s3131_s26, %s26_s26   ;;  %s3059_s25 = sphi %s3129_s25, %s3788_s25   ;;  %s3055_s24 = sphi %s3127_s24, %s3787_s24   ;;  %s3051_s23 = sphi %s3125_s23, %s3786_s23   ;;  %s3047_s22 = sphi %s3123_s22, %s3785_s22   ;;  %s3043_s21 = sphi %s3121_s21, %s3784_s21  }
  0x10   : > { %3750 = sst [smem:[#allocation19_spill]] %s3055_s24  ;;  %s2393_s28 = sadd.s32 4294967294, %s3063_s26  }
  0x11   : > { %p63_p0 = scmp.ne.s32.totalorder %s3051_s23, %s3047_s22  ;;  %p64_p1 = scmp.eq.s32.totalorder %s3063_s26, 0 }
  0x12   : > { %p69_p2 = scmp.ne.s32.totalorder %s3047_s22, %s3043_s21  ;;  %p3731_p3 = scmp.eq.s32.totalorder %s3152_s27, 0 }
  0x13   : > { %p218_p4 = scmp.eq.s32.totalorder %s3152_s27, 1  ;;  %p3163_p5 = por %p64_p1, %p63_p0 }
  0x14   : > { %p224_p6 = scmp.eq.s32.totalorder %s2393_s28, 1  ;;  %p3169_p7 = por %p3731_p3, %p69_p2 }
  0x15   : > { %p3173_p8 = por %p218_p4, %p63_p0  ;;  %p2394_p10 = scmp.ge.s32.totalorder %s3063_s26, 1 }
  0x16   : > { %p3177_p9 = por %p224_p6, %p69_p2  ;;  %p231_p11 = scmp.lt.s32.totalorder %s3063_s26, 3 }
  0x17   : > { %s3753_s8 = scalar_select %p3173_p8, 1, 0 }
  0x18   : > { %s3755_s9 = scalar_select %p3177_p9, 1, 0 }
  0x19   : > { %3754 = sst [smem:[#allocation20_spill]] %s3753_s8  ;;  %p3183_p12 = pnand %p2394_p10, %p231_p11 }
  0x1a   : > { %3756 = sst [smem:[#allocation21_spill]] %s3755_s9  ;;  %s3065_s11 = smov [#allocation9]  }
  0x1b   : > { %s254_s12 = sshll.u32 %s3065_s11, 4  ;;  %p2745_p13 = pneg %p3183_p12  ;;  %s255_s12 = int_to_ptr.vmem [resolvable:$true] %s254_s12 }
  0x1c   : > { %p2765_p1 = scmp.lt.s32.totalorder %s3063_s26, 2  ;;  %s3066_s14 = smov [#allocation10]  }
  0x1d   : > { %p3193_p4 = pnand %p2745_p13, %p3731_p3  ;;  %s267_s15 = sshll.u32 %s3066_s14, 4  ;;  %s268_s15 = int_to_ptr.vmem [resolvable:$true] %s267_s15 }
  0x1e   : > { %p3199_p2 = pnand %p2765_p1, %p3163_p5  ;;  %s2873_s17 = scalar_lea.vmem %s255_s12, 10240 }
  0x1f   : > { %p2864_p6 = pneg %p3193_p4  ;;  %p2874_p10 = scmp.ne.s32.totalorder %s255_s12, %s2873_s17 }
  0x20   : > { %p2881_p0 = scmp.lt.s32.totalorder %s255_s12, %s255_s12  ;;  %p2882_p3 = scmp.lt.s32.totalorder %s2873_s17, %s2873_s17 }
  0x21   : > { %p2876_p11 = pnand %p2874_p10, %p2864_p6 }
  0x22   : > { %p2883_p9 = por %p2882_p3, %p2881_p0 }
  0x23   : > { %p2877_p13 = pneg %p2876_p11 }
  0x25   : > { %p2884_p8 = pnand %p2883_p9, %p2877_p13 }
  0x27   : > { %2887 = shalt.err (!%p2884_p8)
}
  0x28   : > { %s3733_s18 = smov 128   ;;  %s3734_s19 = smov 8  }
  0x29   : > { %s3760_s4 = sld [smem:[#allocation25_spill]]  ;;  %s2899_s30 = scalar_lea.vmem %s268_s15, 10240 }
  0x2a   : > { %p2900_p5 = scmp.ne.s32.totalorder %s268_s15, %s2899_s30  ;;  %p2907_p9 = scmp.lt.s32.totalorder %s268_s15, %s268_s15 }
  0x2b   : > { %p2908_p8 = scmp.lt.s32.totalorder %s2899_s30, %s2899_s30 }
  0x2c   : > { %p2902_p1 = pnand %p2900_p5, %p2864_p6 }
  0x2d   : > { %p2909_p0 = por %p2908_p8, %p2907_p9 }
  0x2e   : > { %p2903_p3 = pneg %p2902_p1 }
  0x2f   : > { %2748 = dma.hbm_to_vmem [thread:$0]  (!%p3193_p4), %s3760_s4, 10240, %s255_s12, [#allocation8], %s3733_s18, %s3733_s18, %s3734_s19  }
  0x30   : > { %p2910_p10 = pnand %p2909_p0, %p2903_p3 }
  0x32   : > { %2913 = shalt.err (!%p2910_p10)
}
  0x33   : > { %s3735_s11 = smov 640   ;;  %s3070_s12 = smov 40  }
  0x34   : > { %s3761_s5 = sld [smem:[#allocation26_spill]]  ;;  %s3227_s20 = sand.u32 1, %s3051_s23  }
  0x35   : > { %s45_s28 = sadd.s32 1, %s3059_s25  ;;  %s2399_s30 = sshll.u32 %s3227_s20, 6 }
  0x36   : > { %p47_p6 = scmp.ge.s32.totalorder %s45_s28, 2  ;;  %s3737_s18 = smul.u32 1280, %s3059_s25 }
  0x37   : > { %s285_s19 = scalar_lea.vmem [#allocation4], %s2399_s30  ;;  %s3763_s0 = sld [smem:[#allocation23_spill]] }
  0x38   : > { %s304_s29 = sshll.u32 %s285_s19, 4  ;;  %s3790_s28 = smov (%p47_p6, %s45_s28), 0  ;;  %s305_s29 = int_to_ptr.vmem [resolvable:$true] %s304_s29 }
  0x39   : > { %3762 = sst [smem:[#allocation22_spill]] %s3790_s28  ;;  %s282_s17 = scalar_lea.sflag [#allocation5], %s3227_s20 }
  0x3a   : > { %2751 = dma.hbm_to_vmem [thread:$0]  (!%p3193_p4), %s3761_s5, 10240, %s268_s15, [#allocation11], %s3735_s11, %s3735_s11, %s3070_s12  }
  0x3b   : > { %s49_s15 = ssub.s32 %s3059_s25, %s3790_s28  ;;  %p2916_p11 = pneg %p3199_p2 }
  0x3c   : > { %p3241_p4 = scmp.eq.s32.totalorder %s49_s15, 0  ;;  %s2927_s11 = scalar_lea.vmem %s305_s29, 1024 }
  0x3d   : > { %s301_s14 = scalar_lea.hbm %s3763_s0, %s3737_s18  ;;  %p2928_p13 = scmp.ne.s32.totalorder %s305_s29, %s2927_s11 }
  0x3e   : > { %s3071_s19 = smov [#allocation4]  }
  0x3f   : > { %p2930_p5 = pnand %p2928_p13, %p2916_p11  ;;  %s2932_s30 = sshll.u32 %s3071_s19, 4  ;;  %s2933_s30 = int_to_ptr.vmem [resolvable:$false] %s2932_s30 }
  0x40   : > { %s2934_s4 = scalar_lea.vmem %s2933_s30, 2048  ;;  %p2935_p3 = scmp.lt.s32.totalorder %s305_s29, %s2933_s30 }
  0x41   : > { %p2931_p1 = pneg %p2930_p5  ;;  %p2936_p9 = scmp.lt.s32.totalorder %s2934_s4, %s2927_s11 }
  0x43   : > { %p2937_p8 = por %p2936_p9, %p2935_p3 }
  0x45   : > { %p2938_p0 = pnand %p2937_p8, %p2931_p1 }
  0x47   : > { %2941 = shalt.err (!%p2938_p0)
}
  0x48   : > { %s3072_s13 = smov 512   ;;  %s3073_s15 = smov 32  }
  0x49   : > { %s3765_s18 = smov 640   ;;  %s3766_s19 = sadd.s32 1, %s3051_s23 }
  0x4a   : > { %2755 = dma.hbm_to_vmem [thread:$0]  (!%p3199_p2), %s301_s14, 1024, %s305_s29, %s282_s17, %s3765_s18, %s3072_s13, %s3073_s15  }
  0x4b   : > { %s3259_s30 = scalar_select %p3241_p4, %s3051_s23, %s3766_s19  }
  0x4c   : > { %s314_s11 = sand.u32 1, %s3063_s26   ;;  %s2401_s4 = sshll.u32 %s3227_s20, 4 }
  0x4d   : > { %s3767_s0 = smul.u32 1280, %s3059_s25  ;;  %s318_s21 = scalar_lea.vmem [#allocation7], %s2401_s4 }
  0x4e   : > { %s331_s6 = sshll.u32 %s318_s21, 4  ;;  %s315_s24 = scalar_lea.sflag [#allocation8], %s314_s11  ;;  %s332_s6 = int_to_ptr.vmem [resolvable:$true] %s331_s6 }
  0x4f   : > { %s2289_s9 = scalar_lea.hbm %s3725_s1, %s3767_s0  ;;  %s2955_s3 = scalar_lea.vmem %s332_s6, 256 }
  0x50   : > { %s2290_s8 = scalar_lea.hbm %s2289_s9, 512  ;;  %p2956_p10 = scmp.ne.s32.totalorder %s332_s6, %s2955_s3 }
  0x51   : > { %s3074_s29 = smov [#allocation7]  }
  0x52   : > { %p2958_p6 = pnand %p2956_p10, %p2916_p11  ;;  %s2960_s14 = sshll.u32 %s3074_s29, 4  ;;  %s2961_s14 = int_to_ptr.vmem [resolvable:$false] %s2960_s14 }
  0x53   : > { %s2962_s20 = scalar_lea.vmem %s2961_s14, 512  ;;  %p2963_p4 = scmp.lt.s32.totalorder %s332_s6, %s2961_s14 }
  0x54   : > { %p2959_p13 = pneg %p2958_p6  ;;  %p2964_p5 = scmp.lt.s32.totalorder %s2962_s20, %s2955_s3 }
  0x56   : > { %p2965_p1 = por %p2964_p5, %p2963_p4 }
  0x58   : > { %p2966_p3 = pnand %p2965_p1, %p2959_p13 }
  0x5a   : > { %2969 = shalt.err (!%p2966_p3)
}
  0x5b   : > { %s3768_s0 = smov 8   ;;  %s3769_s5 = smov 128  }
  0x5c   : > { %2758 = dma.hbm_to_vmem [thread:$0]  (!%p3199_p2), %s2290_s8, 256, %s332_s6, %s315_s24, %s3765_s18, %s3769_s5, %s3768_s0  }
  0x5d   : > { %343 = sbr.rel (%p3183_p12) target bundleno = 1503 (0x5df), region = 44  ;;  %s3279_s21 = sand.u32 (!%p3183_p12), 1, %s3047_s22  }
  0x5e   : > { %s2404_s9 = sshll.u32 (!%p3183_p12), %s3279_s21, 6  ;;  %s346_s3 = scalar_lea.sflag (!%p3183_p12), [#allocation5], %s3279_s21 }
  0x5f   : > { %s3283_s28 = scalar_lea.vmem (!%p3183_p12), [#allocation4], %s2404_s9 }
  0x62   : > { %3022 = dma.done.wait (%p3169_p7), %s346_s3, 1024  }
  0x63   : > { %3024 = vsyncadd (%p3169_p7), %s346_s3, 4294966272  ;;  %s354_s6 = sand.u32 1, %s3152_s27   ;;  %s2405_s24 = sshll.u32 %s3279_s21, 4 }
  0x64   : > { %s355_s8 = scalar_lea.sflag [#allocation8], %s354_s6  ;;  %s3291_s10 = scalar_lea.vmem [#allocation7], %s2405_s24 }
  0x65   : > { %3026 = dma.done.wait (%p3169_p7), %s355_s8, 256  }
  0x66   : > { %3028 = vsyncadd (%p3169_p7), %s355_s8, 4294967040  ;;  %p3770_p12 = scmp.eq.s32.totalorder %s3152_s27, 0 }
  0x68   : > { %3030 = dma.done.wait (%p3770_p12), [#allocation8], 10240   ;;  %p3771_p2 = pmov %p3770_p12 }
  0x6a   : > { %3032 = vsyncadd (%p3771_p2), [#allocation8], 4294957056  ;;  %p3772_p11 = pmov %p3771_p2 }
  0x6b   : > { %p3773_p9 = pmov %p3771_p2 }
  0x6c   : > { %3034 = dma.done.wait (%p3772_p11), [#allocation11], 10240  }
  0x6d   : > { %3036 = vsyncadd (%p3773_p9), [#allocation11], 4294957056  ;;  %v480_v0 = vld [vmem:[#allocation9 + $0xf8] sm:$0xff]  ;;  %v479_v4 = vld [vmem:[#allocation9 + $0xf0] sm:$0xff]  ;;  %s3076_s27 = smov 64   ;;  %s3077_s7 = smov 63  }
  0x6e   : > { %v512_v1 = vld [vmem:[#allocation9 + $0x1f8] sm:$0xff]  ;;  %2478 = vmatprep.subr.mxu0 %v480_v0  ;;  %v511_v5 = vld [vmem:[#allocation9 + $0x1f0] sm:$0xff]  ;;  %v478_v8 = vld [vmem:[#allocation9 + $0xe8] sm:$0xff]  ;;  %s3078_s16 = smov 94   ;;  %s3079_s18 = smov 95   ;;  %vm1655_vm4 = vcmask 130048  }
  0x6f   : > { %v464_v2 = vld [vmem:[#allocation9 + $0x78] sm:$0xff]  ;;  %2516 = vmatprep.subr.mxu1 %v512_v1  ;;  %v463_v6 = vld [vmem:[#allocation9 + $0x70] sm:$0xff]  ;;  %v510_v9 = vld [vmem:[#allocation9 + $0x1e8] sm:$0xff]  ;;  %s3080_s12 = smov 96   ;;  %s3081_s17 = smov 126   ;;  %vm1165_vm5 = vcmask 1043456  }
  0x70   : > { %v496_v3 = vld [vmem:[#allocation9 + $0x178] sm:$0xff]  ;;  %2479 = vmatpush3.msra.mxu0 %v464_v2  ;;  %v495_v7 = vld [vmem:[#allocation9 + $0x170] sm:$0xff]  ;;  %v462_v10 = vld [vmem:[#allocation9 + $0x68] sm:$0xff]  ;;  %s3082_s13 = smov 127   ;;  %s3083_s15 = smov 62   ;;  %vm1377_vm6 = vcmask 515072  }
  0x71   : > { %2517 = vmatpush3.msra.mxu1 %v496_v3  ;;  %2480 = vmatprep.subr.mxu0 %v479_v4  ;;  %v494_v11 = vld [vmem:[#allocation9 + $0x168] sm:$0xff]  ;;  %v477_v12 = vld [vmem:[#allocation9 + $0xe0] sm:$0xff]  ;;  %v476_v16 = vld [vmem:[#allocation9 + $0xd8] sm:$0xff]  ;;  %s3774_s14 = sld [smem:[#allocation24_spill]]  ;;  %vm1342_vm7 = vcmask 523264   ;;  %vm1307_vm8 = vcmask 769024  }
  0x72   : > { %2518 = vmatprep.subr.mxu1 %v511_v5  ;;  %2481 = vmatpush3.msra.mxu0 %v463_v6  ;;  %v509_v13 = vld [vmem:[#allocation9 + $0x1e0] sm:$0xff]  ;;  %v508_v17 = vld [vmem:[#allocation9 + $0x1d8] sm:$0xff]  ;;  %v475_v20 = vld [vmem:[#allocation9 + $0xd0] sm:$0xff]  ;;  %vm1272_vm9 = vcmask 777216   ;;  %vm1237_vm10 = vcmask 785408   ;;  %vm1202_vm11 = vcmask 1031168  }
  0x73   : > { %2519 = vmatpush3.msra.mxu1 %v495_v7  ;;  %2482 = vmatprep.subr.mxu0 %v478_v8  ;;  %v461_v14 = vld [vmem:[#allocation9 + $0x60] sm:$0xff]  ;;  %v460_v18 = vld [vmem:[#allocation9 + $0x58] sm:$0xff]  ;;  %v507_v21 = vld [vmem:[#allocation9 + $0x1d0] sm:$0xff]  ;;  %vm1167_vm12 = vcmask 1039360   ;;  %vm1412_vm13 = vcmask 506880   ;;  %s3775_s20 = sld [smem:[#allocation19_spill]] }
  0x74   : > { %2520 = vmatprep.subr.mxu1 %v510_v9  ;;  %v493_v15 = vld [vmem:[#allocation9 + $0x160] sm:$0xff]  ;;  %2483 = vmatpush3.msra.mxu0 %v462_v10  ;;  %v492_v19 = vld [vmem:[#allocation9 + $0x158] sm:$0xff]  ;;  %v459_v22 = vld [vmem:[#allocation9 + $0x50] sm:$0xff]  ;;  %s2408_s0 = sshll.u32 %s3279_s21, 5  ;;  %s3777_s8 = sld [smem:[#allocation27_spill]] }
  0x75   : > { %2521 = vmatpush3.msra.mxu1 %v494_v11  ;;  %2484 = vmatprep.subr.mxu0 %v477_v12  ;;  %v491_v23 = vld [vmem:[#allocation9 + $0x150] sm:$0xff]  ;;  %v474_v24 = vld [vmem:[#allocation9 + $0xc8] sm:$0xff]  ;;  %v473_v28 = vld [vmem:[#allocation9 + $0xc0] sm:$0xff]  ;;  %s404_s9 = scalar_lea.vmem [#allocation12], %s2408_s0 }
  0x76   : > { %2522 = vmatprep.subr.mxu1 %v509_v13  ;;  %2485 = vmatpush3.msra.mxu0 %v461_v14  ;;  %v506_v25 = vld [vmem:[#allocation9 + $0x1c8] sm:$0xff]  ;;  %v505_v29 = vld [vmem:[#allocation9 + $0x1c0] sm:$0xff]  ;;  %v472_v32 = vld [vmem:[#allocation9 + $0xb8] sm:$0xff]  ;;  %s2240_s3 = sshll.u32 %s404_s9, 4  ;;  %s2241_s3 = int_to_ptr.vmem [resolvable:$true] %s2240_s3 }
  0x77   : > { %2523 = vmatpush3.msra.mxu1 %v493_v15  ;;  %2486 = vmatprep.subr.mxu0 %v476_v16  ;;  %v458_v26 = vld [vmem:[#allocation9 + $0x48] sm:$0xff]  ;;  %v457_v30 = vld [vmem:[#allocation9 + $0x40] sm:$0xff]  ;;  %v504_v33 = vld [vmem:[#allocation9 + $0x1b8] sm:$0xff] }
  0x78   : > { %2524 = vmatprep.subr.mxu1 %v508_v17  ;;  %2487 = vmatpush3.msra.mxu0 %v460_v18  ;;  %v490_v27 = vld [vmem:[#allocation9 + $0x148] sm:$0xff]  ;;  %v489_v31 = vld [vmem:[#allocation9 + $0x140] sm:$0xff]  ;;  %v456_v34 = vld [vmem:[#allocation9 + $0x38] sm:$0xff] }
  0x79   : > { %2525 = vmatpush3.msra.mxu1 %v492_v19  ;;  %2488 = vmatprep.subr.mxu0 %v475_v20  ;;  %v488_v35 = vld [vmem:[#allocation9 + $0x138] sm:$0xff]  ;;  %v471_v36 = vld [vmem:[#allocation9 + $0xb0] sm:$0xff]  ;;  %v470_v40 = vld [vmem:[#allocation9 + $0xa8] sm:$0xff]  ;;  %s2473_s5 = sshll.u32 %s3775_s20, 9 }
  0x7a   : > { %2526 = vmatprep.subr.mxu1 %v507_v21  ;;  %2489 = vmatpush3.msra.mxu0 %v459_v22  ;;  %v503_v37 = vld [vmem:[#allocation9 + $0x1b0] sm:$0xff]  ;;  %v502_v41 = vld [vmem:[#allocation9 + $0x1a8] sm:$0xff]  ;;  %v469_v44 = vld [vmem:[#allocation9 + $0xa0] sm:$0xff] }
  0x7b   : > { %2527 = vmatpush3.msra.mxu1 %v491_v23  ;;  %2490 = vmatprep.subr.mxu0 %v474_v24  ;;  %v455_v38 = vld [vmem:[#allocation9 + $0x30] sm:$0xff]  ;;  %v454_v42 = vld [vmem:[#allocation9 + $0x28] sm:$0xff]  ;;  %v501_v45 = vld [vmem:[#allocation9 + $0x1a0] sm:$0xff] }
  0x7c   : > { %2528 = vmatprep.subr.mxu1 %v506_v25  ;;  %2491 = vmatpush3.msra.mxu0 %v458_v26  ;;  %v487_v39 = vld [vmem:[#allocation9 + $0x130] sm:$0xff]  ;;  %v486_v43 = vld [vmem:[#allocation9 + $0x128] sm:$0xff]  ;;  %v453_v46 = vld [vmem:[#allocation9 + $0x20] sm:$0xff] }
  0x7d   : > { %2529 = vmatpush3.msra.mxu1 %v490_v27  ;;  %2492 = vmatprep.subr.mxu0 %v473_v28  ;;  %v485_v47 = vld [vmem:[#allocation9 + $0x120] sm:$0xff]  ;;  %v468_v48 = vld [vmem:[#allocation9 + $0x98] sm:$0xff]  ;;  %v467_v52 = vld [vmem:[#allocation9 + $0x90] sm:$0xff] }
  0x7e   : > { %2530 = vmatprep.subr.mxu1 %v505_v29  ;;  %2493 = vmatpush3.msra.mxu0 %v457_v30  ;;  %v500_v49 = vld [vmem:[#allocation9 + $0x198] sm:$0xff]  ;;  %v499_v53 = vld [vmem:[#allocation9 + $0x190] sm:$0xff]  ;;  %v466_v56 = vld [vmem:[#allocation9 + $0x88] sm:$0xff] }
  0x7f   : > { %2531 = vmatpush3.msra.mxu1 %v489_v31  ;;  %2494 = vmatprep.subr.mxu0 %v472_v32  ;;  %v452_v50 = vld [vmem:[#allocation9 + $0x18] sm:$0xff]  ;;  %v451_v54 = vld [vmem:[#allocation9 + $0x10] sm:$0xff]  ;;  %v3306_v57 = vld [vmem:[%s3283_s28 + $0x8] sm:$0xff] }
  0x80   : > { %2532 = vmatprep.subr.mxu1 %v504_v33  ;;  %2495 = vmatpush3.msra.mxu0 %v456_v34  ;;  %v484_v51 = vld [vmem:[#allocation9 + $0x118] sm:$0xff]  ;;  %v483_v55 = vld [vmem:[#allocation9 + $0x110] sm:$0xff]  ;;  %v498_v58 = vld [vmem:[#allocation9 + $0x188] sm:$0xff]  ;;  %v440_v2 = vmul.f32 %v3306_v57, %v3306_v57 }
  0x81   : > { %2533 = vmatpush3.msra.mxu1 %v488_v35  ;;  %2496 = vmatprep.subr.mxu0 %v471_v36  ;;  %v450_v59 = vld [vmem:[#allocation9 + $0x8] sm:$0xff]  ;;  %v3309_v60 = vld [vmem:[%s3283_s28 + $0x18] sm:$0xff]  ;;  %v3312_v62 = vld [vmem:[%s3283_s28] sm:$0xff] }
  0x82   : > { %2534 = vmatprep.subr.mxu1 %v503_v37  ;;  %2497 = vmatpush3.msra.mxu0 %v455_v38  ;;  %v482_v61 = vld [vmem:[#allocation9 + $0x108] sm:$0xff]  ;;  %v3315_v63 = vld [vmem:[%s3283_s28 + $0x10] sm:$0xff]  ;;  %v465_v0 = vld [vmem:[#allocation9 + $0x80] sm:$0xff]  ;;  %v442_v5 = vmul.f32 %v3309_v60, %v3309_v60  ;;  %v439_v8 = vmul.f32 %v3312_v62, %v3312_v62 }
  0x83   : > { %2535 = vmatpush3.msra.mxu1 %v487_v39  ;;  %2498 = vmatprep.subr.mxu0 %v470_v40  ;;  %v497_v1 = vld [vmem:[#allocation9 + $0x180] sm:$0xff]  ;;  %v3320_v3 = vld [vmem:[%s3283_s28 + $0x28] sm:$0xff]  ;;  %v3325_v6 = vld [vmem:[%s3283_s28 + $0x38] sm:$0xff]  ;;  %v441_v9 = vmul.f32 %v3315_v63, %v3315_v63 }
  0x84   : > { %2536 = vmatprep.subr.mxu1 %v502_v41  ;;  %2499 = vmatpush3.msra.mxu0 %v454_v42  ;;  %v449_v4 = vld [vmem:[#allocation9] sm:$0xff]  ;;  %v445_v10 = vmul.f32 %v3320_v3, %v3320_v3  ;;  %v3334_v11 = vld [vmem:[%s3283_s28 + $0x30] sm:$0xff]  ;;  %v528_v12 = vld [vmem:[#allocation9 + $0x278] sm:$0xff]  ;;  %v447_v13 = vmul.f32 %v3325_v6, %v3325_v6 }
  0x85   : > { %2537 = vmatpush3.msra.mxu1 %v486_v43  ;;  %2500 = vmatprep.subr.mxu0 %v469_v44  ;;  %v481_v7 = vld [vmem:[#allocation9 + $0x100] sm:$0xff]  ;;  %v527_v16 = vld [vmem:[#allocation9 + $0x270] sm:$0xff]  ;;  %v446_v17 = vmul.f32 %v3334_v11, %v3334_v11  ;;  %v526_v19 = vld [vmem:[#allocation9 + $0x268] sm:$0xff] }
  0x86   : > { %2538 = vmatprep.subr.mxu1 %v501_v45  ;;  %2501 = vmatpush3.msra.mxu0 %v453_v46  ;;  %v3339_v14 = vld [vmem:[%s3283_s28 + $0x20] sm:$0xff]  ;;  %v524_v22 = vld [vmem:[#allocation9 + $0x258] sm:$0xff]  ;;  %v523_v23 = vld [vmem:[#allocation9 + $0x250] sm:$0xff]  ;;  %s3776_s28 = sld [smem:[#allocation20_spill]] }
  0x87   : > { %2539 = vmatpush3.msra.mxu1 %v485_v47  ;;  %2502 = vmatprep.subr.mxu0 %v468_v48  ;;  %v3342_v15 = vld [vmem:[%s3291_s10] sm:$0xff]  ;;  %v444_v18 = vmul.f32 %v3339_v14, %v3339_v14  ;;  %v522_v24 = vld [vmem:[#allocation9 + $0x248] sm:$0xff]  ;;  %v520_v26 = vld [vmem:[#allocation9 + $0x238] sm:$0xff] }
  0x88   : > { %2540 = vmatprep.subr.mxu1 %v500_v49  ;;  %2503 = vmatpush3.msra.mxu0 %v452_v50  ;;  %v443_v20 = vmul.f32 %v3342_v15, %v3342_v15  ;;  %v525_v21 = vld [vmem:[#allocation9 + $0x260] sm:$0xff]  ;;  %v519_v27 = vld [vmem:[#allocation9 + $0x230] sm:$0xff]  ;;  %v518_v28 = vld [vmem:[#allocation9 + $0x228] sm:$0xff] }
  0x89   : > { %2541 = vmatpush3.msra.mxu1 %v484_v51  ;;  %2504 = vmatprep.subr.mxu0 %v467_v52  ;;  %v521_v25 = vld [vmem:[#allocation9 + $0x240] sm:$0xff]  ;;  %v516_v30 = vld [vmem:[#allocation9 + $0x218] sm:$0xff]  ;;  %v515_v31 = vld [vmem:[#allocation9 + $0x210] sm:$0xff] }
  0x8a   : > { %2542 = vmatprep.subr.mxu1 %v499_v53  ;;  %2505 = vmatpush3.msra.mxu0 %v451_v54  ;;  %v517_v29 = vld [vmem:[#allocation9 + $0x220] sm:$0xff]  ;;  %v514_v32 = vld [vmem:[#allocation9 + $0x208] sm:$0xff]  ;;  %v869_v37 = vld [vmem:[#allocation10 + $0x258] sm:$0xff] }
  0x8b   : > { %2543 = vmatpush3.msra.mxu1 %v483_v55  ;;  %2506 = vmatprep.subr.mxu0 %v466_v56  ;;  %v3351_v33 = vld [vmem:[%s3291_s10 + $0x8] sm:$0xff]  ;;  %v513_v34 = vld [vmem:[#allocation9 + $0x200] sm:$0xff]  ;;  %v872_v38 = vld [vmem:[#allocation10 + $0x270] sm:$0xff]  ;;  %s3682_s10 = scalar_lea.hbm %s3777_s8, %s2473_s5 }
  0x8c   : > { %2544 = vmatprep.subr.mxu1 %v498_v58  ;;  %2507 = vmatpush3.msra.mxu0 %v450_v59  ;;  %v448_v35 = vmul.f32 %v3351_v33, %v3351_v33  ;;  %v870_v36 = vld [vmem:[#allocation10 + $0x260] sm:$0xff]  ;;  %v865_v39 = vld [vmem:[#allocation10 + $0x238] sm:$0xff]  ;;  %v871_v40 = vld [vmem:[#allocation10 + $0x268] sm:$0xff]  ;;  %p3778_p8 = scmp.ne.s32.totalorder %s3776_s28, 0 }
  0x8d   : > { %2545 = vmatpush3.msra.mxu1 %v482_v61  ;;  %2508 = vmatprep.subr.mxu0 %v465_v0  ;;  %v864_v41 = vld [vmem:[#allocation10 + $0x230] sm:$0xff]  ;;  %v867_v42 = vld [vmem:[#allocation10 + $0x248] sm:$0xff]  ;;  %v866_v44 = vld [vmem:[#allocation10 + $0x240] sm:$0xff] }
  0x8e   : > { %2546 = vmatprep.subr.mxu1 %v497_v1  ;;  %2509 = vmatpush3.msra.mxu0 %v449_v4  ;;  %v860_v43 = vld [vmem:[#allocation10 + $0x210] sm:$0xff]  ;;  %v859_v45 = vld [vmem:[#allocation10 + $0x208] sm:$0xff]  ;;  %v862_v46 = vld [vmem:[#allocation10 + $0x220] sm:$0xff] }
  0x8f   : > { %593 = vmatprep.mubr.f32.mxu0 %v440_v2  ;;  %2547 = vmatpush3.msra.mxu1 %v481_v7  ;;  %v855_v47 = vld [vmem:[#allocation10 + $0x1e8] sm:$0xff]  ;;  %v861_v48 = vld [vmem:[#allocation10 + $0x218] sm:$0xff]  ;;  %v854_v49 = vld [vmem:[#allocation10 + $0x1e0] sm:$0xff] }
  0x90   : > { %668 = vmatprep.mubr.f32.mxu1 %v442_v5  ;;  %594 = vmatmul.mubr.f32.vlgmr.msra.gmra.mxu0 %v439_v8  ;;  %v857_v50 = vld [vmem:[#allocation10 + $0x1f8] sm:$0xff]  ;;  %v850_v51 = vld [vmem:[#allocation10 + $0x1c0] sm:$0xff]  ;;  %v856_v52 = vld [vmem:[#allocation10 + $0x1f0] sm:$0xff] }
  0x91   : > { %669 = vmatmul.mubr.f32.vlgmr.msra.gmra.mxu1 %v441_v9  ;;  %2660 = vmatprep.subr.mxu0 %v528_v12  ;;  %v849_v53 = vld [vmem:[#allocation10 + $0x1b8] sm:$0xff]  ;;  %v852_v54 = vld [vmem:[#allocation10 + $0x1d0] sm:$0xff]  ;;  %v851_v56 = vld [vmem:[#allocation10 + $0x1c8] sm:$0xff] }
  0x92   : > { %598 = vmatprep.mubr.f32.mxu0 %v445_v10  ;;  %2661 = vmatpush3.msra.mxu0 %v528_v12  ;;  %v845_v55 = vld [vmem:[#allocation10 + $0x198] sm:$0xff]  ;;  %v844_v58 = vld [vmem:[#allocation10 + $0x190] sm:$0xff]  ;;  %v847_v59 = vld [vmem:[#allocation10 + $0x1a8] sm:$0xff] }
  0x93   : > { %673 = vmatprep.mubr.f32.mxu1 %v447_v13  ;;  %2662 = vmatprep.subr.mxu0 %v527_v16  ;;  %v840_v61 = vld [vmem:[#allocation10 + $0x170] sm:$0xff]  ;;  %v846_v0 = vld [vmem:[#allocation10 + $0x1a0] sm:$0xff]  ;;  %v839_v1 = vld [vmem:[#allocation10 + $0x168] sm:$0xff] }
  0x94   : > { %2663 = vmatpush3.msra.mxu0 %v527_v16  ;;  %874 = vmatprep.subr.mxu1 %v870_v36  ;;  %v842_v2 = vld [vmem:[#allocation10 + $0x180] sm:$0xff]  ;;  %v835_v4 = vld [vmem:[#allocation10 + $0x148] sm:$0xff]  ;;  %v841_v5 = vld [vmem:[#allocation10 + $0x178] sm:$0xff] }
  0x95   : > { %674 = vmatmul.mubr.f32.gmra.mxu1 %v446_v17  ;;  %2664 = vmatprep.subr.mxu0 %v526_v19  ;;  %v834_v7 = vld [vmem:[#allocation10 + $0x140] sm:$0xff]  ;;  %v837_v8 = vld [vmem:[#allocation10 + $0x158] sm:$0xff]  ;;  %v836_v10 = vld [vmem:[#allocation10 + $0x150] sm:$0xff] }
  0x96   : > { %599 = vmatmul.mubr.f32.gmra.mxu0 %v444_v18  ;;  %875 = vmatpush1.msra.mxu1 %v869_v37  ;;  %v830_v9 = vld [vmem:[#allocation10 + $0x120] sm:$0xff]  ;;  %v829_v12 = vld [vmem:[#allocation10 + $0x118] sm:$0xff]  ;;  %v832_v13 = vld [vmem:[#allocation10 + $0x130] sm:$0xff] }
  0x97   : > { %2665 = vmatpush3.msra.mxu0 %v526_v19  ;;  %2692 = vmatprep.mubr.f32.mxu0 %v443_v20  ;;  %v825_v16 = vld [vmem:[#allocation10 + $0xf8] sm:$0xff]  ;;  %v831_v17 = vld [vmem:[#allocation10 + $0x128] sm:$0xff]  ;;  %v824_v18 = vld [vmem:[#allocation10 + $0xf0] sm:$0xff] }
  0x98   : > { %2666 = vmatprep.subr.mxu0 %v525_v21  ;;  %876 = vmatprep.subr.mxu1 %v865_v39  ;;  %v827_v19 = vld [vmem:[#allocation10 + $0x108] sm:$0xff]  ;;  %v820_v20 = vld [vmem:[#allocation10 + $0xd0] sm:$0xff] }
  0x99   : > { %2667 = vmatpush3.msra.mxu0 %v525_v21  ;;  %877 = vmatpush1.msra.mxu1 %v864_v41  ;;  %v826_v21 = vld [vmem:[#allocation10 + $0x100] sm:$0xff]  ;;  %v807_v36 = vld [vmem:[#allocation10 + $0x68] sm:$0xff]  ;;  %v800_v37 = vld [vmem:[#allocation10 + $0x30] sm:$0xff] }
  0x9a   : > { %2668 = vmatprep.subr.mxu0 %v524_v22  ;;  %878 = vmatprep.subr.mxu1 %v860_v43  ;;  %v799_v39 = vld [vmem:[#allocation10 + $0x28] sm:$0xff]  ;;  %v794_v43 = vld [vmem:[#allocation10] sm:$0xff] }
  0x9b   : > { %2669 = vmatpush3.msra.mxu0 %v524_v22  ;;  %879 = vmatpush1.msra.mxu1 %v859_v45  ;;  %v819_v22 = vld [vmem:[#allocation10 + $0xc8] sm:$0xff]  ;;  %v796_v45 = vld [vmem:[#allocation10 + $0x10] sm:$0xff] }
  0x9c   : > { %2670 = vmatprep.subr.mxu0 %v523_v23  ;;  %880 = vmatprep.subr.mxu1 %v855_v47  ;;  %v795_v41 = vld [vmem:[#allocation10 + $0x8] sm:$0xff]  ;;  %v3075_v47 = vmov 0.0  }
  0x9d   : > { %2671 = vmatpush3.msra.mxu0 %v523_v23  ;;  %881 = vmatpush1.msra.mxu1 %v854_v49  ;;  %v822_v23 = vld [vmem:[#allocation10 + $0xe0] sm:$0xff] }
  0x9e   : > { %2672 = vmatprep.subr.mxu0 %v522_v24  ;;  %882 = vmatprep.subr.mxu1 %v850_v51 }
  0x9f   : > { %2673 = vmatpush3.msra.mxu0 %v522_v24  ;;  %883 = vmatpush1.msra.mxu1 %v849_v53  ;;  %v815_v24 = vld [vmem:[#allocation10 + $0xa8] sm:$0xff] }
  0xa0   : > { %2674 = vmatprep.subr.mxu0 %v521_v25  ;;  %884 = vmatprep.subr.mxu1 %v845_v55 }
  0xa1   : > { %2675 = vmatpush3.msra.mxu0 %v521_v25  ;;  %885 = vmatpush1.msra.mxu1 %v844_v58  ;;  %v821_v25 = vld [vmem:[#allocation10 + $0xd8] sm:$0xff] }
  0xa2   : > { %2676 = vmatprep.subr.mxu0 %v520_v26  ;;  %886 = vmatprep.subr.mxu1 %v840_v61 }
  0xa3   : > { %2677 = vmatpush3.msra.mxu0 %v520_v26  ;;  %887 = vmatpush1.msra.mxu1 %v839_v1  ;;  %v814_v26 = vld [vmem:[#allocation10 + $0xa0] sm:$0xff] }
  0xa4   : > { %2678 = vmatprep.subr.mxu0 %v519_v27  ;;  %888 = vmatprep.subr.mxu1 %v835_v4 }
  0xa5   : > { %2679 = vmatpush3.msra.mxu0 %v519_v27  ;;  %889 = vmatpush1.msra.mxu1 %v834_v7  ;;  %v817_v27 = vld [vmem:[#allocation10 + $0xb8] sm:$0xff] }
  0xa6   : > { %2680 = vmatprep.subr.mxu0 %v518_v28  ;;  %890 = vmatprep.subr.mxu1 %v830_v9 }
  0xa7   : > { %2681 = vmatpush3.msra.mxu0 %v518_v28  ;;  %891 = vmatpush1.msra.mxu1 %v829_v12  ;;  %v810_v28 = vld [vmem:[#allocation10 + $0x80] sm:$0xff] }
  0xa8   : > { %2682 = vmatprep.subr.mxu0 %v517_v29  ;;  %892 = vmatprep.subr.mxu1 %v825_v16 }
  0xa9   : > { %2683 = vmatpush3.msra.mxu0 %v517_v29  ;;  %893 = vmatpush1.msra.mxu1 %v824_v18  ;;  %v816_v29 = vld [vmem:[#allocation10 + $0xb0] sm:$0xff] }
  0xaa   : > { %2684 = vmatprep.subr.mxu0 %v516_v30  ;;  %894 = vmatprep.subr.mxu1 %v820_v20 }
  0xab   : > { %2685 = vmatpush3.msra.mxu0 %v516_v30  ;;  %895 = vmatpush1.msra.mxu1 %v819_v22  ;;  %v809_v30 = vld [vmem:[#allocation10 + $0x78] sm:$0xff] }
  0xac   : > { %2686 = vmatprep.subr.mxu0 %v515_v31  ;;  %896 = vmatprep.subr.mxu1 %v815_v24 }
  0xad   : > { %2687 = vmatpush3.msra.mxu0 %v515_v31  ;;  %v812_v31 = vld [vmem:[#allocation10 + $0x90] sm:$0xff]  ;;  %897 = vmatpush1.msra.mxu1 %v814_v26 }
  0xae   : > { %2688 = vmatprep.subr.mxu0 %v514_v32  ;;  %898 = vmatprep.subr.mxu1 %v810_v28 }
  0xaf   : > { %2689 = vmatpush3.msra.mxu0 %v514_v32  ;;  %v805_v32 = vld [vmem:[#allocation10 + $0x58] sm:$0xff]  ;;  %899 = vmatpush1.msra.mxu1 %v809_v30 }
  0xb0   : > { %2690 = vmatprep.subr.mxu0 %v513_v34  ;;  %900 = vmatprep.subr.mxu1 %v805_v32 }
  0xb1   : > { %2691 = vmatpush3.msra.mxu0 %v513_v34  ;;  %v811_v34 = vld [vmem:[#allocation10 + $0x88] sm:$0xff]  ;;  %938 = vmatprep.mubr.f32.mxu1 %v3075_v47 }
  0xb2   : > { %2693 = vmatmul.mubr.f32.vlgmr.msra.gmra.mxu0 %v448_v35  ;;  %951 = vmatprep.subr.mxu0 %v872_v38  ;;  %v804_v35 = vld [vmem:[#allocation10 + $0x50] sm:$0xff]  ;;  %v806_v38 = vld [vmem:[#allocation10 + $0x60] sm:$0xff] }
  0xb3   : > { %952 = vmatpush1.msra.mxu0 %v871_v40  ;;  %v802_v40 = vld [vmem:[#allocation10 + $0x40] sm:$0xff]  ;;  %901 = vmatpush1.msra.mxu1 %v804_v35 }
  0xb4   : > { %953 = vmatprep.subr.mxu0 %v867_v42  ;;  %v801_v42 = vld [vmem:[#allocation10 + $0x38] sm:$0xff]  ;;  %902 = vmatprep.subr.mxu1 %v800_v37 }
  0xb5   : > { %954 = vmatpush1.msra.mxu0 %v866_v44  ;;  %v797_v44 = vld [vmem:[#allocation10 + $0x18] sm:$0xff]  ;;  %903 = vmatpush1.msra.mxu1 %v799_v39 }
  0xb6   : > { %955 = vmatprep.subr.mxu0 %v862_v46  ;;  %904 = vmatprep.subr.mxu1 %v795_v41  ;;  %v3355_v46 = vld [vmem:[#allocation10 + $0x278] sm:$0xff] }
  0xb7   : > { %956 = vmatpush1.msra.mxu0 %v861_v48  ;;  %905 = vmatpush1.msra.mxu1 %v794_v43 }
  0xb8   : > { %957 = vmatprep.subr.mxu0 %v857_v50  ;;  %1015 = vmatprep.mubr.f32.mxu0 %v3075_v47 }
  0xb9   : > { %958 = vmatpush1.msra.mxu0 %v856_v52  ;;  %2695 = vmatprep.subr.mxu1 %v3355_v46 }
  0xba   : > { %959 = vmatprep.subr.mxu0 %v852_v54 }
  0xbb   : > { %960 = vmatpush1.msra.mxu0 %v851_v56 }
  0xbc   : > { %961 = vmatprep.subr.mxu0 %v847_v59 }
  0xbd   : > { %962 = vmatpush1.msra.mxu0 %v846_v0 }
  0xbe   : > { %963 = vmatprep.subr.mxu0 %v842_v2 }
  0xbf   : > { %964 = vmatpush1.msra.mxu0 %v841_v5 }
  0xc0   : > { %965 = vmatprep.subr.mxu0 %v837_v8 }
  0xc1   : > { %966 = vmatpush1.msra.mxu0 %v836_v10 }
  0xc2   : > { %967 = vmatprep.subr.mxu0 %v832_v13 }
  0xc3   : > { %968 = vmatpush1.msra.mxu0 %v831_v17 }
  0xc4   : > { %969 = vmatprep.subr.mxu0 %v827_v19 }
  0xc5   : > { %970 = vmatpush1.msra.mxu0 %v826_v21 }
  0xc6   : > { %971 = vmatprep.subr.mxu0 %v822_v23 }
  0xc7   : > { %972 = vmatpush1.msra.mxu0 %v821_v25 }
  0xc8   : > { %973 = vmatprep.subr.mxu0 %v817_v27 }
  0xc9   : > { %974 = vmatpush1.msra.mxu0 %v816_v29 }
  0xca   : > { %975 = vmatprep.subr.mxu0 %v812_v31 }
  0xcb   : > { %976 = vmatpush1.msra.mxu0 %v811_v34 }
  0xcc   : > { %977 = vmatprep.subr.mxu0 %v807_v36 }
  0xcd   : > { %978 = vmatpush1.msra.mxu0 %v806_v38 }
  0xce   : > { %979 = vmatprep.subr.mxu0 %v802_v40 }
  0xcf   : > { %980 = vmatpush1.msra.mxu0 %v801_v42 }
  0xd0   : > { %981 = vmatprep.subr.mxu0 %v797_v44  ;;  %v868_v44 = vld [vmem:[#allocation10 + $0x250] sm:$0xff] }
  0xd1   : > { %982 = vmatpush1.msra.mxu0 %v796_v45 }
 0x150   : > { %v2510_v48 = vpop.f32.mrf.mxu0 }
 0x151   : > { %v2548_v49 = vpop.f32.mrf.mxu1 }
 0x152   : > { %v2511_v50 = vpop.f32.mrf.mxu0 }
 0x153   : > { %v2549_v51 = vpop.f32.mrf.mxu1  ;;  %v2512_v61 = vadd.f32 %v2511_v50, %v2510_v48  ;;  %v863_v48 = vld [vmem:[#allocation10 + $0x228] sm:$0xff]  ;;  %v858_v50 = vld [vmem:[#allocation10 + $0x200] sm:$0xff] }
 0x154   : > { %v2550_v0 = vadd.f32 %v2549_v51, %v2548_v49  ;;  %v853_v51 = vld [vmem:[#allocation10 + $0x1d8] sm:$0xff] }
 0x155   : > { %v2551_v53 = vpop.f32.mrf.mxu1 }
 0x156   : > { %v2513_v52 = vpop.f32.mrf.mxu0  ;;  %v671_v4 = vadd.f32 %v2550_v0, %v2512_v61  ;;  %v808_v61 = vld [vmem:[#allocation10 + $0x70] sm:$0xff]  ;;  %v803_v0 = vld [vmem:[#allocation10 + $0x48] sm:$0xff] }
 0x157   : > { %v2552_v55 = vpop.f32.mrf.mxu1 }
 0x158   : > { %v2514_v54 = vpop.f32.mrf.mxu0  ;;  %v2553_v58 = vadd.f32 %v2552_v55, %v2551_v53  ;;  %v838_v53 = vld [vmem:[#allocation10 + $0x160] sm:$0xff]  ;;  %v828_v55 = vld [vmem:[#allocation10 + $0x110] sm:$0xff] }
 0x159   : > { %v2515_v56 = vadd.f32 %v2514_v54, %v2513_v52  ;;  %v848_v52 = vld [vmem:[#allocation10 + $0x1b0] sm:$0xff]  ;;  %v833_v54 = vld [vmem:[#allocation10 + $0x138] sm:$0xff] }
 0x15b   : > { %v676_v59 = vadd.f32 %v2553_v58, %v2515_v56  ;;  %v823_v56 = vld [vmem:[#allocation10 + $0xe8] sm:$0xff]  ;;  %v818_v58 = vld [vmem:[#allocation10 + $0xc0] sm:$0xff] }
 0x172   : > { %v2694_v1 = vpop.f32.mrf.mxu0 }
 0x173   : > { %v751_v2 = vadd.f32 %v2694_v1, %v676_v59  ;;  %v813_v59 = vld [vmem:[#allocation10 + $0x98] sm:$0xff]  ;;  %v798_v1 = vld [vmem:[#allocation10 + $0x20] sm:$0xff] }
 0x174   : > { %v745_v5 = vpop.f32.mrf.mxu0 }
 0x175   : > { %2838 = vrsqrt.f32 %v751_v2  ;;  %v746_v7 = vadd.f32 %v745_v5, %v671_v4  ;;  %vm763_vm0 = vcmp.eq.f32.partialorder %v751_v2, inf  ;;  %v766_v10 = vand.u32 2147483648, %v751_v2 }
 0x176   : > { %vm765_vm1 = vcmp.eq.f32.partialorder %v751_v2, 0.0 }
 0x177   : > { %2840 = vrsqrt.f32 %v746_v7  ;;  %vm756_vm2 = vcmp.eq.f32.partialorder %v746_v7, inf  ;;  %v759_v18 = vand.u32 2147483648, %v746_v7  ;;  %vm758_vm3 = vcmp.eq.f32.partialorder %v746_v7, 0.0 }
 0x182   : > { %v2839_v8 = vpop.eup %2838 }
 0x183   : > { %v762_v9 = vmul.f32 %v2839_v8, %v751_v2 }
 0x184   : > { %v2841_v12 = vpop.eup %2840 }
 0x185   : > { %v764_v13 = vsel %vm763_vm0, %v751_v2, %v762_v9  ;;  %v755_v16 = vmul.f32 %v2841_v12, %v746_v7 }
 0x186   : > { %v767_v17 = vsel %vm765_vm1, %v766_v10, %v764_v13 }
 0x187   : > { %v769_v19 = vmax.f32 %v767_v17, 1e-15  ;;  %v757_v20 = vsel %vm756_vm2, %v746_v7, %v755_v16 }
 0x188   : > { %v760_v21 = vsel %vm758_vm3, %v759_v18, %v757_v20 }
 0x189   : > { %v2410_v22 = vclamps-f32 %v769_v19, 0.99999  ;;  %v768_v23 = vmax.f32 %v760_v21, 1e-15 }
 0x18b   : > { %v775_v24 = vadd.f32 1.0, %v2410_v22  ;;  %v781_v25 = vsub.f32 1.0, %v2410_v22  ;;  %v2409_v26 = vclamps-f32 %v768_v23, 0.99999 }
 0x18d   : > { %2842 = vlog2.f32 %v775_v24  ;;  %v774_v27 = vadd.f32 1.0, %v2409_v26  ;;  %v780_v28 = vsub.f32 1.0, %v2409_v26 }
 0x18e   : > { %2844 = vlog2.f32 %v781_v25 }
 0x18f   : > { %2846 = vlog2.f32 %v774_v27 }
 0x190   : > { %2848 = vlog2.f32 %v780_v28 }
 0x191   : > { %2850 = vrcp.f32 %v768_v23 }
 0x192   : > { %2852 = vrcp.f32 %v769_v19 }
 0x19a   : > { %v2843_v29 = vpop.eup %2842 }
 0x19b   : > { %v2845_v30 = vpop.eup %2844  ;;  %v779_v32 = vmul.f32 0.6931472, %v2843_v29  ;;  %v3084_v29 = vmov 0  }
 0x19c   : > { %v2847_v31 = vpop.eup %2846  ;;  %v785_v34 = vmul.f32 0.6931472, %v2845_v30  ;;  %2835 = vset.pattern.permute.xlu0 %v3084_v29  ;;  %v1756_v30 = vld [vmem:[%s3774_s14] sm:$0xff] }
 0x19d   : > { %v2849_v35 = vpop.eup %2848  ;;  %v777_v36 = vmul.f32 0.6931472, %v2847_v31 }
 0x19e   : > { %v783_v37 = vmul.f32 0.6931472, %v2849_v35  ;;  %v787_v39 = vsub.f32 %v779_v32, %v785_v34  ;;  %v2851_v41 = vpop.eup %2850 }
 0x19f   : > { %v2853_v45 = vpop.eup %2852 }
 0x1a0   : > { %v786_v38 = vsub.f32 %v777_v36, %v783_v37  ;;  %v789_v43 = vmul.f32 0.5, %v787_v39 }
 0x1a2   : > { %v788_v40 = vmul.f32 0.5, %v786_v38  ;;  %v793_v49 = vmul.f32 %v2853_v45, %v789_v43 }
 0x1a4   : > { %v791_v42 = vmul.f32 %v2851_v41, %v788_v40 }
 0x1a6   : > { %939 = vmatmul.mubr.f32.vlgmr.msra.gmra.mxu1 %v791_v42  ;;  %1016 = vmatmul.mubr.f32.vlgmr.msra.gmra.mxu0 %v791_v42 }
 0x1a7   : > { %2696 = vmatpush3.msra.mxu1 %v3355_v46  ;;  %944 = vmatprep.mubr.f32.mxu1 %v3075_v47  ;;  %v843_v46 = vld [vmem:[#allocation10 + $0x188] sm:$0xff] }
 0x1a8   : > { %2697 = vmatprep.subr.mxu1 %v868_v44  ;;  %1021 = vmatprep.mubr.f32.mxu0 %v3075_v47 }
 0x1a9   : > { %2698 = vmatpush3.msra.mxu1 %v868_v44 }
 0x1aa   : > { %2699 = vmatprep.subr.mxu1 %v863_v48  ;;  %945 = vmatmul.mubr.f32.gmra.mxu1 %v793_v49 }
 0x1ab   : > { %1022 = vmatmul.mubr.f32.gmra.mxu0 %v793_v49  ;;  %2700 = vmatpush3.msra.mxu1 %v863_v48 }
 0x1ac   : > { %2701 = vmatprep.subr.mxu1 %v858_v50  ;;  %2727 = vmatprep.mubr.f32.mxu1 %v791_v42 }
 0x1ad   : > { %2702 = vmatpush3.msra.mxu1 %v858_v50 }
 0x1ae   : > { %2703 = vmatprep.subr.mxu1 %v853_v51 }
 0x1af   : > { %2704 = vmatpush3.msra.mxu1 %v853_v51 }
 0x1b0   : > { %2705 = vmatprep.subr.mxu1 %v848_v52 }
 0x1b1   : > { %2706 = vmatpush3.msra.mxu1 %v848_v52 }
 0x1b2   : > { %2707 = vmatprep.subr.mxu1 %v843_v46 }
 0x1b3   : > { %2708 = vmatpush3.msra.mxu1 %v843_v46 }
 0x1b4   : > { %2709 = vmatprep.subr.mxu1 %v838_v53 }
 0x1b5   : > { %2710 = vmatpush3.msra.mxu1 %v838_v53 }
 0x1b6   : > { %2711 = vmatprep.subr.mxu1 %v833_v54 }
 0x1b7   : > { %2712 = vmatpush3.msra.mxu1 %v833_v54 }
 0x1b8   : > { %2713 = vmatprep.subr.mxu1 %v828_v55 }
 0x1b9   : > { %2714 = vmatpush3.msra.mxu1 %v828_v55 }
 0x1ba   : > { %2715 = vmatprep.subr.mxu1 %v823_v56 }
 0x1bb   : > { %2716 = vmatpush3.msra.mxu1 %v823_v56 }
 0x1bc   : > { %2717 = vmatprep.subr.mxu1 %v818_v58 }
 0x1bd   : > { %2718 = vmatpush3.msra.mxu1 %v818_v58 }
 0x1be   : > { %2719 = vmatprep.subr.mxu1 %v813_v59 }
 0x1bf   : > { %2720 = vmatpush3.msra.mxu1 %v813_v59 }
 0x1c0   : > { %2721 = vmatprep.subr.mxu1 %v808_v61 }
 0x1c1   : > { %2722 = vmatpush3.msra.mxu1 %v808_v61 }
 0x1c2   : > { %2723 = vmatprep.subr.mxu1 %v803_v0 }
 0x1c3   : > { %2724 = vmatpush3.msra.mxu1 %v803_v0 }
 0x1c4   : > { %2725 = vmatprep.subr.mxu1 %v798_v1 }
 0x1c5   : > { %2726 = vmatpush3.msra.mxu1 %v798_v1 }
 0x1c6   : > { %2728 = vmatmul.mubr.f32.vlgmr.msra.gmra.mxu1 %v793_v49 }
 0x266   : > { %v940_v2 = vpop.f32.mrf.mxu1  ;;  %v1017_v4 = vpop.f32.mrf.mxu0 }
 0x267   : > { %v3364_v8 = vmul.f32 %v940_v2, %v3312_v62  ;;  %v3367_v9 = vmul.f32 %v1017_v4, %v3315_v63 }
 0x268   : > { %v942_v5 = vpop.f32.mrf.mxu1  ;;  %v1019_v7 = vpop.f32.mrf.mxu0 }
 0x269   : > { %v3370_v10 = vmul.f32 %v942_v5, %v3306_v57  ;;  %v3373_v12 = vmul.f32 %v1019_v7, %v3309_v60 }
 0x26a   : > { %v946_v13 = vpop.f32.mrf.mxu1 }
 0x26b   : > { %v2467_v16 = vpack.c.bf16 %v3370_v10, %v3364_v8  ;;  %v3379_v17 = vpack.c.bf16 %v3373_v12, %v3367_v9  ;;  %v3382_v62 = vmul.f32 %v946_v13, %v3339_v14  ;;  %v1023_v18 = vpop.f32.mrf.mxu0 }
 0x26c   : > { %v3385_v63 = vmul.f32 %v1023_v18, %v3334_v11  ;;  %v948_v57 = vpop.f32.mrf.mxu1 }
 0x26d   : > { %v2474_v60 = vpack.c.bf16 %v3382_v62, %v3364_v8  ;;  %v3390_v19 = vmul.f32 %v948_v57, %v3320_v3  ;;  %v1025_v20 = vpop.f32.mrf.mxu0  ;;  %1325 = vrot.lane.b32.xlu1 %v3379_v17, %s3076_s27  ;;  %1358 = vrot.lane.b32.xlu0 %v2467_v16, %s3077_s7 }
 0x26e   : > { %v2476_v14 = vpack.c.bf16 %v3385_v63, %v3367_v9  ;;  %v3398_v11 = vmul.f32 %v1025_v20, %v3325_v6  ;;  %v1849_v9 = vld [vmem:[#allocation9 + $0x1f0] sm:$0xff] }
 0x26f   : > { %v2475_v21 = vpack.c.bf16 %v3390_v19, %v3370_v10  ;;  %v2469_v6 = vpack.c.bf16 %v3390_v19, %v3382_v62 }
 0x270   : > { %v2477_v3 = vpack.c.bf16 %v3398_v11, %v3373_v12  ;;  %v2470_v22 = vpack.c.bf16 %v3398_v11, %v3385_v63  ;;  %v1850_v11 = vld [vmem:[#allocation9 + $0x1f8] sm:$0xff]  ;;  %v1801_v63 = vld [vmem:[#allocation9 + $0x70] sm:$0xff] }
 0x271   : > { %1290 = vrot.lane.b32.xlu1 %v3379_v17, %s3078_s16  ;;  %1360 = vrot.lane.b32.xlu0 %v3379_v17, %s3077_s7 }
 0x275   : > { %1255 = vrot.lane.b32.xlu1 %v3379_v17, %s3079_s18  ;;  %1323 = vrot.lane.b32.xlu0 %v2467_v16, %s3076_s27 }
 0x279   : > { %1220 = vrot.lane.b32.xlu1 %v3379_v17, %s3080_s12  ;;  %1288 = vrot.lane.b32.xlu0 %v2467_v16, %s3078_s16 }
 0x27d   : > { %1185 = vrot.lane.b32.xlu1 %v3379_v17, %s3081_s17  ;;  %1253 = vrot.lane.b32.xlu0 %v2467_v16, %s3079_s18 }
 0x281   : > { %1218 = vrot.lane.b32.xlu0 %v2467_v16, %s3080_s12  ;;  %1364 = vrot.lane.b32.xlu1 %v2469_v6, %s3077_s7 }
 0x285   : > { %1183 = vrot.lane.b32.xlu0 %v2467_v16, %s3081_s17  ;;  %1329 = vrot.lane.b32.xlu1 %v2469_v6, %s3076_s27 }
 0x286   : > { %v2729_v23 = vpop.f32.mrf.mxu1 }
 0x287   : > { %v1112_v24 = vmul.f32 %v2729_v23, %v3351_v33 }
 0x288   : > { %v1094_v26 = vpop.f32.mrf.mxu1 }
 0x289   : > { %1366 = vrot.lane.b32.xlu0 %v2470_v22, %s3077_s7  ;;  %1294 = vrot.lane.b32.xlu1 %v2469_v6, %s3078_s16  ;;  %v2472_v25 = vpack.c.bf16 %v1112_v24, %v1112_v24  ;;  %v1107_v33 = vmul.f32 %v1094_v26, %v3342_v15  ;;  %v3454_v15 = vld [vmem:[%s3726_s2] sm:$0xff] }
 0x28a   : > { %v2418_v28 = vcombine.high %v3454_v15, %v3454_v15  ;;  %v2417_v12 = vcombine.low %v3454_v15, %v3454_v15  ;;  %v1832_v15 = vld [vmem:[#allocation9 + $0x168] sm:$0xff] }
 0x28b   : > { %v2471_v27 = vpack.c.bf16 %v1107_v33, %v1107_v33 }
 0x28c   : > { %2455 = vmatprep.mubr.msk.bf16.mxu0 %vm1655_vm4, %v2418_v28  ;;  %2456 = vmatprep.mubr.msk.bf16.mxu1 %vm1655_vm4, %v2418_v28 }
 0x28d   : > { %1331 = vrot.lane.b32.xlu0 %v2470_v22, %s3076_s27  ;;  %1259 = vrot.lane.b32.xlu1 %v2469_v6, %s3079_s18 }
 0x291   : > { %1296 = vrot.lane.b32.xlu0 %v2470_v22, %s3078_s16  ;;  %1224 = vrot.lane.b32.xlu1 %v2469_v6, %s3080_s12 }
 0x295   : > { %1261 = vrot.lane.b32.xlu0 %v2470_v22, %s3079_s18  ;;  %1368 = vrot.lane.b32.xlu1 %v2472_v25, %s3077_s7 }
 0x299   : > { %1226 = vrot.lane.b32.xlu0 %v2470_v22, %s3080_s12  ;;  %1333 = vrot.lane.b32.xlu1 %v2472_v25, %s3076_s27 }
 0x29d   : > { %1191 = vrot.lane.b32.xlu0 %v2470_v22, %s3081_s17  ;;  %1298 = vrot.lane.b32.xlu1 %v2472_v25, %s3078_s16 }
 0x2a1   : > { %1147 = vrot.lane.b32.xlu0 %v2467_v16, %s3082_s13  ;;  %1263 = vrot.lane.b32.xlu1 %v2472_v25, %s3079_s18 }
 0x2a5   : > { %1155 = vrot.lane.b32.xlu0 %v2470_v22, %s3082_s13  ;;  %1228 = vrot.lane.b32.xlu1 %v2472_v25, %s3080_s12 }
 0x2a9   : > { %1393 = vrot.lane.b32.xlu0 %v2467_v16, %s3083_s15  ;;  %1362 = vrot.lane.b32.xlu1 %v2471_v27, %s3077_s7  ;;  %s2971_s7 = scalar_lea.vmem %s2241_s3, 512 }
 0x2aa   : > { %p2972_p7 = scmp.ne.s32.totalorder %s2241_s3, %s2971_s7 }
 0x2ac   : > { %p2973_p0 = pnand %p2972_p7, %p3778_p8 }
 0x2ad   : > { %1327 = vrot.lane.b32.xlu0 %v2471_v27, %s3076_s27  ;;  %1189 = vrot.lane.b32.xlu1 %v2469_v6, %s3081_s17  ;;  %s2224_s27 = scalar_lea.sflag [#allocation6], %s3279_s21 }
 0x2ae   : > { %p2974_p10 = pneg %p2973_p0 }
 0x2b1   : > { %1292 = vrot.lane.b32.xlu0 %v2471_v27, %s3078_s16  ;;  %1193 = vrot.lane.b32.xlu1 %v2472_v25, %s3081_s17  ;;  %s3085_s16 = smov [#allocation12]  }
 0x2b5   : > { %1257 = vrot.lane.b32.xlu0 %v2471_v27, %s3079_s18  ;;  %1149 = vrot.lane.b32.xlu1 %v3379_v17, %s3082_s13  ;;  %s2975_s18 = sshll.u32 %s3085_s16, 4  ;;  %s2976_s18 = int_to_ptr.vmem [resolvable:$false] %s2975_s18 }
 0x2b6   : > { %p2978_p6 = scmp.lt.s32.totalorder %s2241_s3, %s2976_s18 }
 0x2b9   : > { %1222 = vrot.lane.b32.xlu0 %v2471_v27, %s3080_s12  ;;  %1153 = vrot.lane.b32.xlu1 %v2469_v6, %s3082_s13  ;;  %s2977_s12 = scalar_lea.vmem %s2976_s18, 1024 }
 0x2ba   : > { %p2979_p13 = scmp.lt.s32.totalorder %s2977_s12, %s2971_s7 }
 0x2bc   : > { %p2980_p4 = por %p2979_p13, %p2978_p6 }
 0x2bd   : > { %1187 = vrot.lane.b32.xlu0 %v2471_v27, %s3081_s17  ;;  %1157 = vrot.lane.b32.xlu1 %v2472_v25, %s3082_s13 }
 0x2be   : > { %p2981_p5 = pnand %p2980_p4, %p2974_p10 }
 0x2c1   : > { %1151 = vrot.lane.b32.xlu0 %v2471_v27, %s3082_s13  ;;  %1395 = vrot.lane.b32.xlu1 %v3379_v17, %s3083_s15 }
 0x2c5   : > { %1397 = vrot.lane.b32.xlu0 %v2471_v27, %s3083_s15  ;;  %1399 = vrot.lane.b32.xlu1 %v2469_v6, %s3083_s15 }
 0x2c9   : > { %1401 = vrot.lane.b32.xlu0 %v2470_v22, %s3083_s15  ;;  %1403 = vrot.lane.b32.xlu1 %v2472_v25, %s3083_s15 }
 0x2cd   : > { %1759 = vperm.xlu0 %2835, %v1756_v30  }
 0x2df   : > { %v3461_v31 = vpop.permute.xlu1 %1325  ;;  %v1359_v32 = vpop.permute.xlu0 %1358 }
 0x2e0   : > { %v1370_v49 = vrot.slane %v1359_v32, 4  ;;  %v1336_v55 = vrot.slane %v3461_v31, 4 }
 0x2e3   : > { %v3463_v34 = vpop.permute.xlu1 %1290  ;;  %v3465_v35 = vpop.permute.xlu0 %1360 }
 0x2e4   : > { %v1371_v48 = vrot.slane %v3465_v35, 4  ;;  %v1301_v16 = vrot.slane %v3463_v34, 4 }
 0x2e6   : > { %v1376_v46 = vsel %vm1165_vm5, %v1370_v49, %v1371_v48 }
 0x2e7   : > { %v3467_v36 = vpop.permute.xlu1 %1255  ;;  %v1324_v37 = vpop.permute.xlu0 %1323  ;;  %v1378_v1 = vsel %vm1377_vm6, %v1359_v32, %v1376_v46 }
 0x2e8   : > { %v1335_v50 = vrot.slane %v1324_v37, 4  ;;  %v1266_v27 = vrot.slane %v3467_v36, 4 }
 0x2ea   : > { %v1341_v58 = vsel %vm1165_vm5, %v1335_v50, %v1336_v55 }
 0x2eb   : > { %v3469_v38 = vpop.permute.xlu1 %1220  ;;  %v1289_v39 = vpop.permute.xlu0 %1288  ;;  %v1343_v18 = vsel %vm1342_vm7, %v1324_v37, %v1341_v58 }
 0x2ec   : > { %v1300_v59 = vrot.slane %v1289_v39, 4 }
 0x2ee   : > { %v1306_v57 = vsel %vm1165_vm5, %v1300_v59, %v1301_v16 }
 0x2ef   : > { %v3471_v40 = vpop.permute.xlu1 %1185  ;;  %v1254_v41 = vpop.permute.xlu0 %1253  ;;  %v1308_v29 = vsel %vm1307_vm8, %v1289_v39, %v1306_v57 }
 0x2f0   : > { %v1265_v20 = vrot.slane %v1254_v41, 4 }
 0x2f2   : > { %v1271_v30 = vsel %vm1165_vm5, %v1265_v20, %v1266_v27 }
 0x2f3   : > { %v3473_v42 = vpop.permute.xlu0 %1218  ;;  %v1365_v43 = vpop.permute.xlu1 %1364  ;;  %v1273_v58 = vsel %vm1272_vm9, %v1254_v41, %v1271_v30 }
 0x2f4   : > { %v1373_v53 = vrot.slane %v1365_v43, 4  ;;  %v1230_v32 = vrot.slane %v3473_v42, 4 }
 0x2f7   : > { %v3475_v44 = vpop.permute.xlu0 %1183  ;;  %v1330_v45 = vpop.permute.xlu1 %1329 }
 0x2f8   : > { %v1338_v4 = vrot.slane %v1330_v45, 4 }
 0x2fb   : > { %v3478_v51 = vpop.permute.xlu0 %1366  ;;  %v1295_v52 = vpop.permute.xlu1 %1294 }
 0x2fc   : > { %v1374_v54 = vrot.slane %v3478_v51, 4  ;;  %v1303_v24 = vrot.slane %v1295_v52, 4 }
 0x2fe   : > { %v1381_v56 = vsel %vm1165_vm5, %v1373_v53, %v1374_v54 }
 0x2ff   : > { %v3491_v61 = vpop.permute.xlu0 %1331  ;;  %v1260_v0 = vpop.permute.xlu1 %1259  ;;  %v1382_v2 = vsel %vm1377_vm6, %v1365_v43, %v1381_v56  ;;  %v1231_v56 = vrot.slane %v3469_v38, 4 }
 0x300   : > { %v1339_v5 = vrot.slane %v3491_v61, 4  ;;  %v2447_v7 = vcombine.low %v1378_v1, %v1382_v2  ;;  %v2448_v13 = vcombine.high %v1378_v1, %v1382_v2  ;;  %v1268_v49 = vrot.slane %v1260_v0, 4 }
 0x301   : > { %v1236_v59 = vsel %vm1165_vm5, %v1230_v32, %v1231_v56  ;;  %v1195_v32 = vrot.slane %v3475_v44, 4 }
 0x302   : > { %v1346_v17 = vsel %vm1165_vm5, %v1338_v4, %v1339_v5  ;;  %1659 = vmatprep.subr.bf16.mxu0 %v2448_v13 }
 0x303   : > { %v3504_v6 = vpop.permute.xlu0 %1296  ;;  %1660 = vmatpush1.bf16.msra.mxu0 %v2447_v7  ;;  %v1225_v22 = vpop.permute.xlu1 %1224  ;;  %v1347_v23 = vsel %vm1342_vm7, %v1330_v45, %v1346_v17 }
 0x304   : > { %v1304_v25 = vrot.slane %v3504_v6, 4  ;;  %v2443_v26 = vcombine.low %v1343_v18, %v1347_v23  ;;  %v2444_v33 = vcombine.high %v1343_v18, %v1347_v23  ;;  %v1233_v4 = vrot.slane %v1225_v22, 4 }
 0x305   : > { %v1238_v18 = vsel %vm1237_vm10, %v3473_v42, %v1236_v59 }
 0x306   : > { %v1311_v28 = vsel %vm1165_vm5, %v1303_v24, %v1304_v25  ;;  %1661 = vmatprep.subr.bf16.mxu0 %v2444_v33 }
 0x307   : > { %v3517_v37 = vpop.permute.xlu0 %1261  ;;  %1662 = vmatpush1.bf16.msra.mxu0 %v2443_v26  ;;  %v1369_v43 = vpop.permute.xlu1 %1368  ;;  %v1312_v45 = vsel %vm1307_vm8, %v1295_v52, %v1311_v28 }
 0x308   : > { %v1269_v50 = vrot.slane %v3517_v37, 4  ;;  %v2439_v46 = vcombine.low %v1308_v29, %v1312_v45  ;;  %v2440_v53 = vcombine.high %v1308_v29, %v1312_v45  ;;  %v1375_v28 = vrot.slane %v1369_v43, 4 }
 0x30a   : > { %v1276_v39 = vsel %vm1165_vm5, %v1268_v49, %v1269_v50  ;;  %1663 = vmatprep.subr.bf16.mxu0 %v2440_v53  ;;  %v1383_v42 = vsel %vm1165_vm5, %v1374_v54, %v1375_v28 }
 0x30b   : > { %v3529_v52 = vpop.permute.xlu0 %1226  ;;  %1664 = vmatpush1.bf16.msra.mxu0 %v2439_v46  ;;  %v1334_v1 = vpop.permute.xlu1 %1333  ;;  %v1277_v2 = vsel %vm1272_vm9, %v1260_v0, %v1276_v39  ;;  %v1196_v46 = vrot.slane %v3471_v40, 4 }
 0x30c   : > { %v1234_v7 = vrot.slane %v3529_v52, 4  ;;  %v2435_v13 = vcombine.low %v1273_v58, %v1277_v2  ;;  %v2436_v17 = vcombine.high %v1273_v58, %v1277_v2  ;;  %v1340_v45 = vrot.slane %v1334_v1, 4 }
 0x30d   : > { %v1201_v43 = vsel %vm1165_vm5, %v1195_v32, %v1196_v46  ;;  %v1384_v58 = vsel %vm1377_vm6, %v3478_v51, %v1383_v42 }
 0x30e   : > { %v1241_v41 = vsel %vm1165_vm5, %v1233_v4, %v1234_v7  ;;  %1665 = vmatprep.subr.bf16.mxu0 %v2436_v17  ;;  %v1348_v54 = vsel %vm1165_vm5, %v1339_v5, %v1340_v45 }
 0x30f   : > { %v3538_v57 = vpop.permute.xlu0 %1191  ;;  %1666 = vmatpush1.bf16.msra.mxu0 %v2435_v13  ;;  %v1299_v20 = vpop.permute.xlu1 %1298  ;;  %v1242_v23 = vsel %vm1237_vm10, %v1225_v22, %v1241_v41 }
 0x310   : > { %v2431_v0 = vcombine.low %v1238_v18, %v1242_v23  ;;  %v2432_v24 = vcombine.high %v1238_v18, %v1242_v23  ;;  %v1199_v59 = vrot.slane %v3538_v57, 4  ;;  %v1305_v1 = vrot.slane %v1299_v20, 4 }
 0x312   : > { %1667 = vmatprep.subr.bf16.mxu0 %v2432_v24 }
 0x313   : > { %v3541_v26 = vpop.permute.xlu0 %1147  ;;  %1668 = vmatpush1.bf16.msra.mxu0 %v2431_v0  ;;  %v1264_v33 = vpop.permute.xlu1 %1263 }
 0x314   : > { %v1270_v20 = vrot.slane %v1264_v33, 4 }
 0x317   : > { %v3543_v29 = vpop.permute.xlu0 %1155  ;;  %v1229_v30 = vpop.permute.xlu1 %1228 }
 0x31b   : > { %v3549_v49 = vpop.permute.xlu0 %1393  ;;  %v1363_v22 = vpop.permute.xlu1 %1362 }
 0x31c   : > { %v1372_v53 = vrot.slane %v1363_v22, 4 }
 0x31e   : > { %v1379_v39 = vsel %vm1165_vm5, %v1371_v48, %v1372_v53  ;;  %v1203_v48 = vsel %vm1202_vm11, %v3475_v44, %v1201_v43  ;;  %v1349_v44 = vsel %vm1342_vm7, %v3491_v61, %v1348_v54  ;;  %v1235_v43 = vrot.slane %v1229_v30, 4 }
 0x31f   : > { %v1328_v2 = vpop.permute.xlu0 %1327  ;;  %v1190_v4 = vpop.permute.xlu1 %1189  ;;  %v1380_v13 = vsel %vm1377_vm6, %v3465_v35, %v1379_v39  ;;  %v1163_v30 = vrot.slane %v3543_v29, 4 }
 0x320   : > { %v1337_v17 = vrot.slane %v1328_v2, 4  ;;  %v1198_v41 = vrot.slane %v1190_v4, 4  ;;  %v2449_v18 = vcombine.low %v1380_v13, %v1384_v58  ;;  %v2450_v23 = vcombine.high %v1380_v13, %v1384_v58 }
 0x322   : > { %v1344_v51 = vsel %vm1165_vm5, %v1336_v55, %v1337_v17  ;;  %v1206_v5 = vsel %vm1165_vm5, %v1198_v41, %v1199_v59  ;;  %1700 = vmatprep.subr.bf16.mxu1 %v2450_v23  ;;  %v1313_v55 = vsel %vm1165_vm5, %v1304_v25, %v1305_v1 }
 0x323   : > { %v1207_v0 = vsel %vm1202_vm11, %v1190_v4, %v1206_v5  ;;  %v1293_v35 = vpop.permute.xlu0 %1292  ;;  %1701 = vmatpush1.bf16.msra.mxu1 %v2449_v18  ;;  %v1194_v24 = vpop.permute.xlu1 %1193  ;;  %v1345_v28 = vsel %vm1342_vm7, %v3461_v31, %v1344_v51  ;;  %v1278_v31 = vsel %vm1165_vm5, %v1269_v50, %v1270_v20  ;;  %v1314_v58 = vsel %vm1307_vm8, %v3504_v6, %v1313_v55 }
 0x324   : > { %v2427_v32 = vcombine.low %v1203_v48, %v1207_v0  ;;  %v2428_v42 = vcombine.high %v1203_v48, %v1207_v0  ;;  %v1302_v45 = vrot.slane %v1293_v35, 4  ;;  %v2445_v22 = vcombine.low %v1345_v28, %v1349_v44 }
 0x325   : > { %v2446_v33 = vcombine.high %v1345_v28, %v1349_v44  ;;  %v1159_v50 = vrot.slane %v3541_v26, 4  ;;  %v1243_v6 = vsel %vm1165_vm5, %v1234_v7, %v1235_v43  ;;  %v1200_v13 = vrot.slane %v1194_v24, 4 }
 0x326   : > { %v1309_v53 = vsel %vm1165_vm5, %v1301_v16, %v1302_v45  ;;  %1669 = vmatprep.subr.bf16.mxu0 %v2428_v42  ;;  %v1244_v7 = vsel %vm1237_vm10, %v3529_v52, %v1243_v6 }
 0x327   : > { %1702 = vmatprep.subr.bf16.mxu1 %v2446_v33  ;;  %v1258_v61 = vpop.permute.xlu0 %1257  ;;  %1670 = vmatpush1.bf16.msra.mxu0 %v2427_v32  ;;  %v3588_v39 = vpop.permute.xlu1 %1149  ;;  %v1310_v25 = vsel %vm1307_vm8, %v3463_v34, %v1309_v53  ;;  %v1279_v34 = vsel %vm1272_vm9, %v3517_v37, %v1278_v31  ;;  %v1208_v0 = vsel %vm1165_vm5, %v1199_v59, %v1200_v13 }
 0x328   : > { %v1267_v54 = vrot.slane %v1258_v61, 4  ;;  %1703 = vmatpush1.bf16.msra.mxu1 %v2445_v22  ;;  %v1160_v16 = vrot.slane %v3588_v39, 4  ;;  %v2441_v1 = vcombine.low %v1310_v25, %v1314_v58  ;;  %v2442_v2 = vcombine.high %v1310_v25, %v1314_v58 }
 0x32a   : > { %v1274_v4 = vsel %vm1165_vm5, %v1266_v27, %v1267_v54  ;;  %1704 = vmatprep.subr.bf16.mxu1 %v2442_v2  ;;  %v1166_v41 = vsel %vm1165_vm5, %v1159_v50, %v1160_v16 }
 0x32b   : > { %v1223_v17 = vpop.permute.xlu0 %1222  ;;  %v1154_v18 = vpop.permute.xlu1 %1153  ;;  %v1275_v23 = vsel %vm1272_vm9, %v3467_v36, %v1274_v4  ;;  %v1168_v36 = vsel %vm1167_vm12, %v3541_v26, %v1166_v41 }
 0x32c   : > { %v1232_v48 = vrot.slane %v1223_v17, 4  ;;  %1705 = vmatpush1.bf16.msra.mxu1 %v2441_v1  ;;  %v1162_v27 = vrot.slane %v1154_v18, 4  ;;  %v2437_v51 = vcombine.low %v1275_v23, %v1279_v34  ;;  %v2438_v5 = vcombine.high %v1275_v23, %v1279_v34 }
 0x32e   : > { %v1239_v37 = vsel %vm1165_vm5, %v1231_v56, %v1232_v48  ;;  %v1171_v20 = vsel %vm1165_vm5, %v1162_v27, %v1163_v30  ;;  %1706 = vmatprep.subr.bf16.mxu1 %v2438_v5  ;;  %v1818_v48 = vld [vmem:[#allocation9 + $0xf8] sm:$0xff]  ;;  %v1817_v27 = vld [vmem:[#allocation9 + $0xf0] sm:$0xff]  ;;  %v1848_v5 = vld [vmem:[#allocation9 + $0x1e8] sm:$0xff] }
 0x32f   : > { %v1172_v35 = vsel %vm1167_vm12, %v1154_v18, %v1171_v20  ;;  %v1188_v24 = vpop.permute.xlu0 %1187  ;;  %v1158_v28 = vpop.permute.xlu1 %1157  ;;  %v1240_v56 = vsel %vm1237_vm10, %v3469_v38, %v1239_v37  ;;  %v1209_v38 = vsel %vm1202_vm11, %v3538_v57, %v1208_v0  ;;  %v1800_v37 = vld [vmem:[#allocation9 + $0x68] sm:$0xff]  ;;  %v1815_v20 = vld [vmem:[#allocation9 + $0xe0] sm:$0xff] }
 0x330   : > { %v2423_v44 = vcombine.low %v1168_v36, %v1172_v35  ;;  %v2424_v55 = vcombine.high %v1168_v36, %v1172_v35  ;;  %v1197_v32 = vrot.slane %v1188_v24, 4  ;;  %1707 = vmatpush1.bf16.msra.mxu1 %v2437_v51  ;;  %v1164_v42 = vrot.slane %v1158_v28, 4  ;;  %v1816_v51 = vld [vmem:[#allocation9 + $0xe8] sm:$0xff]  ;;  %v1799_v0 = vld [vmem:[#allocation9 + $0x60] sm:$0xff]  ;;  %v1814_v35 = vld [vmem:[#allocation9 + $0xd8] sm:$0xff] }
 0x331   : > { %v2433_v52 = vcombine.low %v1240_v56, %v1244_v7  ;;  %v2434_v45 = vcombine.high %v1240_v56, %v1244_v7  ;;  %v1847_v7 = vld [vmem:[#allocation9 + $0x1e0] sm:$0xff]  ;;  %v1846_v24 = vld [vmem:[#allocation9 + $0x1d8] sm:$0xff] }
 0x332   : > { %v1204_v59 = vsel %vm1165_vm5, %v1196_v46, %v1197_v32  ;;  %1671 = vmatprep.subr.bf16.mxu0 %v2424_v55  ;;  %v1173_v53 = vsel %vm1165_vm5, %v1163_v30, %v1164_v42  ;;  %v1831_v36 = vld [vmem:[#allocation9 + $0x160] sm:$0xff]  ;;  %v1798_v28 = vld [vmem:[#allocation9 + $0x58] sm:$0xff]  ;;  %v1845_v55 = vld [vmem:[#allocation9 + $0x1d0] sm:$0xff] }
 0x333   : > { %1708 = vmatprep.subr.bf16.mxu1 %v2434_v45  ;;  %v1152_v26 = vpop.permute.xlu0 %1151  ;;  %1672 = vmatpush1.bf16.msra.mxu0 %v2423_v44  ;;  %v1396_v22 = vpop.permute.xlu1 %1395  ;;  %v1205_v33 = vsel %vm1202_vm11, %v3471_v40, %v1204_v59  ;;  %v1174_v54 = vsel %vm1167_vm12, %v3543_v29, %v1173_v53  ;;  %v1830_v56 = vld [vmem:[#allocation9 + $0x158] sm:$0xff]  ;;  %v1813_v44 = vld [vmem:[#allocation9 + $0xd0] sm:$0xff]  ;;  %v1844_v45 = vld [vmem:[#allocation9 + $0x1c8] sm:$0xff] }
 0x334   : > { %v1161_v31 = vrot.slane %v1152_v26, 4  ;;  %1709 = vmatpush1.bf16.msra.mxu1 %v2433_v52  ;;  %1673 = vmatprep.subr.bf16.mxu0 %v2475_v21  ;;  %v2429_v46 = vcombine.low %v1205_v33, %v1209_v38  ;;  %v2430_v43 = vcombine.high %v1205_v33, %v1209_v38  ;;  %v1406_v25 = vrot.slane %v1396_v22, 4  ;;  %v1797_v32 = vld [vmem:[#allocation9 + $0x50] sm:$0xff]  ;;  %v1812_v52 = vld [vmem:[#allocation9 + $0xc8] sm:$0xff]  ;;  %v1843_v33 = vld [vmem:[#allocation9 + $0x1c0] sm:$0xff] }
 0x335   : > { %v1829_v42 = vld [vmem:[#allocation9 + $0x150] sm:$0xff]  ;;  %v1796_v59 = vld [vmem:[#allocation9 + $0x48] sm:$0xff]  ;;  %v1795_v38 = vld [vmem:[#allocation9 + $0x40] sm:$0xff] }
 0x336   : > { %v1169_v61 = vsel %vm1165_vm5, %v1160_v16, %v1161_v31  ;;  %1710 = vmatprep.subr.bf16.mxu1 %v2430_v43  ;;  %v1405_v16 = vrot.slane %v3549_v49, 4  ;;  %v1828_v26 = vld [vmem:[#allocation9 + $0x148] sm:$0xff]  ;;  %v1827_v53 = vld [vmem:[#allocation9 + $0x140] sm:$0xff]  ;;  %v1810_v31 = vld [vmem:[#allocation9 + $0xb8] sm:$0xff] }
 0x337   : > { %v1398_v58 = vpop.permute.xlu0 %1397  ;;  %1674 = vmatpush1.bf16.msra.mxu0 %v2474_v60  ;;  %v1400_v40 = vpop.permute.xlu1 %1399  ;;  %v1170_v57 = vsel %vm1167_vm12, %v3588_v39, %v1169_v61  ;;  %v1794_v43 = vld [vmem:[#allocation9 + $0x38] sm:$0xff] }
 0x338   : > { %v1407_v10 = vrot.slane %v1398_v58, 4  ;;  %1711 = vmatpush1.bf16.msra.mxu1 %v2429_v46  ;;  %v2425_v19 = vcombine.low %v1170_v57, %v1174_v54  ;;  %v2426_v21 = vcombine.high %v1170_v57, %v1174_v54  ;;  %v1411_v1 = vsel %vm1165_vm5, %v1405_v16, %v1406_v25  ;;  %v1842_v46 = vld [vmem:[#allocation9 + $0x1b8] sm:$0xff]  ;;  %v1841_v58 = vld [vmem:[#allocation9 + $0x1b0] sm:$0xff]  ;;  %v1808_v54 = vld [vmem:[#allocation9 + $0xa8] sm:$0xff] }
 0x339   : > { %v1408_v62 = vrot.slane %v1400_v40, 4  ;;  %v1413_v4 = vsel %vm1412_vm13, %v3549_v49, %v1411_v1  ;;  %v1834_v49 = vld [vmem:[#allocation9 + $0x178] sm:$0xff]  ;;  %v1825_v57 = vld [vmem:[#allocation9 + $0x130] sm:$0xff]  ;;  %v1807_v16 = vld [vmem:[#allocation9 + $0xa0] sm:$0xff] }
 0x33a   : > { %1712 = vmatprep.subr.bf16.mxu1 %v2426_v21  ;;  %v1414_v8 = vsel %vm1165_vm5, %v1406_v25, %v1407_v10  ;;  %v1826_v61 = vld [vmem:[#allocation9 + $0x138] sm:$0xff]  ;;  %v1809_v25 = vld [vmem:[#allocation9 + $0xb0] sm:$0xff]  ;;  %v1840_v10 = vld [vmem:[#allocation9 + $0x1a8] sm:$0xff] }
 0x33b   : > { %v1402_v2 = vpop.permute.xlu0 %1401  ;;  %v1404_v50 = vpop.permute.xlu1 %1403  ;;  %v1415_v6 = vsel %vm1412_vm13, %v1396_v22, %v1414_v8  ;;  %v1811_v22 = vld [vmem:[#allocation9 + $0xc0] sm:$0xff]  ;;  %v1824_v21 = vld [vmem:[#allocation9 + $0x128] sm:$0xff]  ;;  %v1806_v8 = vld [vmem:[#allocation9 + $0x98] sm:$0xff] }
 0x33c   : > { %v1409_v60 = vrot.slane %v1402_v2, 4  ;;  %1713 = vmatpush1.bf16.msra.mxu1 %v2425_v19  ;;  %v1410_v39 = vrot.slane %v1404_v50, 4  ;;  %v1792_v19 = vld [vmem:[#allocation9 + $0x28] sm:$0xff]  ;;  %v1839_v1 = vld [vmem:[#allocation9 + $0x1a0] sm:$0xff] }
 0x33d   : > { %1714 = vmatprep.subr.bf16.mxu1 %v2477_v3  ;;  %v1802_v3 = vld [vmem:[#allocation9 + $0x78] sm:$0xff]  ;;  %v1823_v50 = vld [vmem:[#allocation9 + $0x120] sm:$0xff] }
 0x33e   : > { %v1416_v29 = vsel %vm1165_vm5, %v1408_v62, %v1409_v60  ;;  %v1418_v30 = vsel %vm1165_vm5, %v1409_v60, %v1410_v39  ;;  %v1838_v62 = vld [vmem:[#allocation9 + $0x198] sm:$0xff] }
 0x33f   : > { %v1417_v34 = vsel %vm1412_vm13, %v1400_v40, %v1416_v29  ;;  %v1419_v13 = vsel %vm1412_vm13, %v1402_v2, %v1418_v30  ;;  %v1793_v40 = vld [vmem:[#allocation9 + $0x30] sm:$0xff]  ;;  %v1791_v2 = vld [vmem:[#allocation9 + $0x20] sm:$0xff]  ;;  %v1790_v60 = vld [vmem:[#allocation9 + $0x18] sm:$0xff] }
 0x340   : > { %1715 = vmatpush1.bf16.msra.mxu1 %v2476_v14  ;;  %v2451_v17 = vcombine.low %v1413_v4, %v1417_v34  ;;  %v2452_v41 = vcombine.high %v1413_v4, %v1417_v34  ;;  %v2453_v18 = vcombine.low %v1415_v6, %v1419_v13  ;;  %v2454_v23 = vcombine.high %v1415_v6, %v1419_v13  ;;  %v1833_v14 = vld [vmem:[#allocation9 + $0x170] sm:$0xff]  ;;  %v1822_v39 = vld [vmem:[#allocation9 + $0x118] sm:$0xff]  ;;  %v1804_v6 = vld [vmem:[#allocation9 + $0x88] sm:$0xff] }
 0x341   : > { %v1805_v29 = vld [vmem:[#allocation9 + $0x90] sm:$0xff]  ;;  %v1836_v13 = vld [vmem:[#allocation9 + $0x188] sm:$0xff] }
 0x342   : > { %1689 = vmatprep.subr.bf16.mxu0 %v2452_v41  ;;  %1730 = vmatprep.subr.bf16.mxu1 %v2454_v23  ;;  %v1837_v30 = vld [vmem:[#allocation9 + $0x190] sm:$0xff]  ;;  %v1820_v41 = vld [vmem:[#allocation9 + $0x108] sm:$0xff]  ;;  %v1835_v23 = vld [vmem:[#allocation9 + $0x180] sm:$0xff] }
 0x343   : > { %1690 = vmatpush2.bf16.msra.mxu0 %v2451_v17  ;;  %v1789_v4 = vld [vmem:[#allocation9 + $0x10] sm:$0xff]  ;;  %v1788_v17 = vld [vmem:[#allocation9 + $0x8] sm:$0xff] }
 0x344   : > { %1731 = vmatpush2.bf16.msra.mxu1 %v2453_v18  ;;  %2590 = vmatprep.subr.mxu0 %v1818_v48  ;;  %v1821_v34 = vld [vmem:[#allocation9 + $0x110] sm:$0xff]  ;;  %v1803_v18 = vld [vmem:[#allocation9 + $0x80] sm:$0xff] }
 0x345   : > { %2625 = vmatprep.subr.mxu1 %v1850_v11  ;;  %v1787_v48 = vld [vmem:[#allocation9] sm:$0xff]  ;;  %v1766_v11 = vlaneseq }
 0x346   : > { %1692 = vmatmul.mubr.bf16.vlgmr.msra.gmra.mxu0 %v2417_v12 }
 0x347   : > { %1733 = vmatmul.mubr.bf16.vlgmr.msra.gmra.mxu1 %v2417_v12  ;;  %2591 = vmatpush3.msra.mxu0 %v1802_v3  ;;  %v1819_v12 = vld [vmem:[#allocation9 + $0x100] sm:$0xff]  ;;  %v1767_v3 = vand.u32 127, %v1766_v11  ;;  %v2033_v11 = vld [vmem:[#allocation10 + $0xf0] sm:$0xff] }
 0x348   : > { %2626 = vmatpush3.msra.mxu1 %v1834_v49  ;;  %2592 = vmatprep.subr.mxu0 %v1817_v27 }
 0x349   : > { %2627 = vmatprep.subr.mxu1 %v1849_v9  ;;  %2593 = vmatpush3.msra.mxu0 %v1801_v63  ;;  %v1768_v49 = vadd.s32 128, %v1767_v3  ;;  %v1770_v27 = vadd.s32 384, %v1767_v3  ;;  %v1769_v9 = vadd.s32 256, %v1767_v3  ;;  %v1760_v63 = vpop.permute.xlu0 %1759 }
 0x34a   : > { %2628 = vmatpush3.msra.mxu1 %v1833_v14  ;;  %2594 = vmatprep.subr.mxu0 %v1816_v51 }
 0x34b   : > { %2629 = vmatprep.subr.mxu1 %v1848_v5  ;;  %2595 = vmatpush3.msra.mxu0 %v1800_v37  ;;  %v1772_v51 = vand.u32 31, %v1768_v49  ;;  %v1774_v37 = vand.u32 31, %v1770_v27  ;;  %v2030_v49 = vld [vmem:[#allocation10 + $0xd0] sm:$0xff]  ;;  %v2032_v27 = vld [vmem:[#allocation10 + $0xe0] sm:$0xff] }
 0x34c   : > { %2630 = vmatpush3.msra.mxu1 %v1832_v15  ;;  %2596 = vmatprep.subr.mxu0 %v1815_v20  ;;  %v1771_v15 = vand.u32 31, %v1767_v3  ;;  %v2035_v3 = vld [vmem:[#allocation10 + $0x100] sm:$0xff] }
 0x34d   : > { %2631 = vmatprep.subr.mxu1 %v1847_v7  ;;  %2597 = vmatpush3.msra.mxu0 %v1799_v0  ;;  %v1773_v0 = vand.u32 31, %v1769_v9  ;;  %vm1776_vm14 = vcmp.lt.s32.totalorder %v1772_v51, 16  ;;  %vm1778_vm15 = vcmp.lt.s32.totalorder %v1774_v37, 16  ;;  %v2029_v9 = vld [vmem:[#allocation10 + $0xc8] sm:$0xff]  ;;  %v2028_v51 = vld [vmem:[#allocation10 + $0xb8] sm:$0xff]  ;;  %v2027_v37 = vld [vmem:[#allocation10 + $0xb0] sm:$0xff] }
 0x34e   : > { %2632 = vmatpush3.msra.mxu1 %v1831_v36  ;;  %2598 = vmatprep.subr.mxu0 %v1814_v35  ;;  %vm1775_vm0 = vcmp.lt.s32.totalorder %v1771_v15, 16  ;;  %v2022_v15 = vld [vmem:[#allocation10 + $0x80] sm:$0xff] }
 0x34f   : > { %2633 = vmatprep.subr.mxu1 %v1846_v24  ;;  %2599 = vmatpush3.msra.mxu0 %v1798_v28  ;;  %vm1777_vm1 = vcmp.lt.s32.totalorder %v1773_v0, 16  ;;  %v2021_v0 = vld [vmem:[#allocation10 + $0x78] sm:$0xff] }
 0x350   : > { %2634 = vmatpush3.msra.mxu1 %v1830_v56  ;;  %2600 = vmatprep.subr.mxu0 %v1813_v44 }
 0x351   : > { %2635 = vmatprep.subr.mxu1 %v1845_v55  ;;  %2601 = vmatpush3.msra.mxu0 %v1797_v32 }
 0x352   : > { %2636 = vmatpush3.msra.mxu1 %v1829_v42  ;;  %2602 = vmatprep.subr.mxu0 %v1812_v52 }
 0x353   : > { %2637 = vmatprep.subr.mxu1 %v1844_v45  ;;  %2603 = vmatpush3.msra.mxu0 %v1796_v59 }
 0x354   : > { %2638 = vmatpush3.msra.mxu1 %v1828_v26  ;;  %2604 = vmatprep.subr.mxu0 %v1811_v22  ;;  %v2070_v26 = vld [vmem:[#allocation10 + $0x260] sm:$0xff]  ;;  %v2072_v22 = vld [vmem:[#allocation10 + $0x270] sm:$0xff] }
 0x355   : > { %2639 = vmatprep.subr.mxu1 %v1843_v33  ;;  %2605 = vmatpush3.msra.mxu0 %v1795_v38  ;;  %v2069_v33 = vld [vmem:[#allocation10 + $0x258] sm:$0xff]  ;;  %v2071_v38 = vld [vmem:[#allocation10 + $0x268] sm:$0xff] }
 0x356   : > { %2640 = vmatpush3.msra.mxu1 %v1827_v53  ;;  %2606 = vmatprep.subr.mxu0 %v1810_v31  ;;  %v2066_v53 = vld [vmem:[#allocation10 + $0x238] sm:$0xff]  ;;  %v2068_v31 = vld [vmem:[#allocation10 + $0x248] sm:$0xff] }
 0x357   : > { %2641 = vmatprep.subr.mxu1 %v1842_v46  ;;  %2607 = vmatpush3.msra.mxu0 %v1794_v43  ;;  %v2065_v46 = vld [vmem:[#allocation10 + $0x230] sm:$0xff]  ;;  %v2067_v43 = vld [vmem:[#allocation10 + $0x240] sm:$0xff] }
 0x358   : > { %2642 = vmatpush3.msra.mxu1 %v1826_v61  ;;  %2608 = vmatprep.subr.mxu0 %v1809_v25  ;;  %v2062_v61 = vld [vmem:[#allocation10 + $0x210] sm:$0xff]  ;;  %v2064_v25 = vld [vmem:[#allocation10 + $0x220] sm:$0xff] }
 0x359   : > { %2643 = vmatprep.subr.mxu1 %v1841_v58  ;;  %2609 = vmatpush3.msra.mxu0 %v1793_v40  ;;  %v2061_v58 = vld [vmem:[#allocation10 + $0x208] sm:$0xff]  ;;  %v2063_v40 = vld [vmem:[#allocation10 + $0x218] sm:$0xff] }
 0x35a   : > { %2644 = vmatpush3.msra.mxu1 %v1825_v57  ;;  %2610 = vmatprep.subr.mxu0 %v1808_v54  ;;  %v2060_v57 = vld [vmem:[#allocation10 + $0x1f8] sm:$0xff]  ;;  %v2057_v54 = vld [vmem:[#allocation10 + $0x1e0] sm:$0xff] }
 0x35b   : > { %2645 = vmatprep.subr.mxu1 %v1840_v10  ;;  %2611 = vmatpush3.msra.mxu0 %v1792_v19  ;;  %v2059_v10 = vld [vmem:[#allocation10 + $0x1f0] sm:$0xff]  ;;  %v2054_v19 = vld [vmem:[#allocation10 + $0x1c0] sm:$0xff] }
 0x35c   : > { %2646 = vmatpush3.msra.mxu1 %v1824_v21  ;;  %2612 = vmatprep.subr.mxu0 %v1807_v16  ;;  %v2056_v21 = vld [vmem:[#allocation10 + $0x1d0] sm:$0xff]  ;;  %v2053_v16 = vld [vmem:[#allocation10 + $0x1b8] sm:$0xff] }
 0x35d   : > { %2647 = vmatprep.subr.mxu1 %v1839_v1  ;;  %2613 = vmatpush3.msra.mxu0 %v1791_v2  ;;  %v2055_v1 = vld [vmem:[#allocation10 + $0x1c8] sm:$0xff]  ;;  %v2050_v2 = vld [vmem:[#allocation10 + $0x198] sm:$0xff] }
 0x35e   : > { %2648 = vmatpush3.msra.mxu1 %v1823_v50  ;;  %2614 = vmatprep.subr.mxu0 %v1806_v8  ;;  %v2052_v50 = vld [vmem:[#allocation10 + $0x1a8] sm:$0xff]  ;;  %v2049_v8 = vld [vmem:[#allocation10 + $0x190] sm:$0xff] }
 0x35f   : > { %2649 = vmatprep.subr.mxu1 %v1838_v62  ;;  %2615 = vmatpush3.msra.mxu0 %v1790_v60  ;;  %v2051_v62 = vld [vmem:[#allocation10 + $0x1a0] sm:$0xff]  ;;  %v2046_v60 = vld [vmem:[#allocation10 + $0x170] sm:$0xff] }
 0x360   : > { %2650 = vmatpush3.msra.mxu1 %v1822_v39  ;;  %2616 = vmatprep.subr.mxu0 %v1805_v29  ;;  %v2048_v39 = vld [vmem:[#allocation10 + $0x180] sm:$0xff]  ;;  %v2045_v29 = vld [vmem:[#allocation10 + $0x168] sm:$0xff] }
 0x361   : > { %2651 = vmatprep.subr.mxu1 %v1837_v30  ;;  %2617 = vmatpush3.msra.mxu0 %v1789_v4  ;;  %v2047_v30 = vld [vmem:[#allocation10 + $0x178] sm:$0xff]  ;;  %v2042_v4 = vld [vmem:[#allocation10 + $0x148] sm:$0xff] }
 0x362   : > { %2652 = vmatpush3.msra.mxu1 %v1821_v34  ;;  %2618 = vmatprep.subr.mxu0 %v1804_v6  ;;  %v2044_v34 = vld [vmem:[#allocation10 + $0x158] sm:$0xff]  ;;  %v2041_v6 = vld [vmem:[#allocation10 + $0x140] sm:$0xff] }
 0x363   : > { %2653 = vmatprep.subr.mxu1 %v1836_v13  ;;  %2619 = vmatpush3.msra.mxu0 %v1788_v17  ;;  %v2043_v13 = vld [vmem:[#allocation10 + $0x150] sm:$0xff]  ;;  %v2038_v17 = vld [vmem:[#allocation10 + $0x120] sm:$0xff] }
 0x364   : > { %2654 = vmatpush3.msra.mxu1 %v1820_v41  ;;  %2620 = vmatprep.subr.mxu0 %v1803_v18  ;;  %v2040_v41 = vld [vmem:[#allocation10 + $0x130] sm:$0xff]  ;;  %v2037_v18 = vld [vmem:[#allocation10 + $0x118] sm:$0xff] }
 0x365   : > { %2655 = vmatprep.subr.mxu1 %v1835_v23  ;;  %2621 = vmatpush3.msra.mxu0 %v1787_v48  ;;  %v2039_v23 = vld [vmem:[#allocation10 + $0x128] sm:$0xff]  ;;  %v2034_v48 = vld [vmem:[#allocation10 + $0xf8] sm:$0xff] }
 0x366   : > { %2656 = vmatpush3.msra.mxu1 %v1819_v12  ;;  %2073 = vmatprep.subr.mxu0 %v2070_v26  ;;  %v2036_v12 = vld [vmem:[#allocation10 + $0x108] sm:$0xff] }
 0x367   : > { %2144 = vmatprep.subr.mxu1 %v2072_v22  ;;  %v2010_v26 = vld [vmem:[#allocation10 + $0x8] sm:$0xff]  ;;  %v2012_v22 = vld [vmem:[#allocation10 + $0x18] sm:$0xff] }
 0x406   : > { %v1693_v14 = vpop.f32.mrf.mxu0 }
 0x407   : > { %v1734_v5 = vpop.f32.mrf.mxu1  ;;  %v3655_v20 = vadd.f32 %v1760_v63, %v1693_v14  ;;  %v2026_v14 = vld [vmem:[#allocation10 + $0xa8] sm:$0xff] }
 0x408   : > { %v1695_v7 = vpop.f32.mrf.mxu0  ;;  %v3657_v36 = vadd.f32 %v1760_v63, %v1734_v5  ;;  %v2025_v5 = vld [vmem:[#allocation10 + $0xa0] sm:$0xff] }
 0x409   : > { %v3659_v35 = vadd.f32 %v1760_v63, %v1695_v7  ;;  %v1736_v24 = vpop.f32.mrf.mxu1  ;;  %v1779_v32 = vmul.f32 %v3655_v20, %v3655_v20  ;;  %v2024_v7 = vld [vmem:[#allocation10 + $0x90] sm:$0xff] }
 0x40a   : > { %v3661_v28 = vadd.f32 %v1760_v63, %v1736_v24  ;;  %v1697_v56 = vpop.f32.mrf.mxu0  ;;  %v1781_v45 = vmul.f32 %v3657_v36, %v3657_v36  ;;  %v2031_v63 = vld [vmem:[#allocation10 + $0xd8] sm:$0xff]  ;;  %v2023_v24 = vld [vmem:[#allocation10 + $0x88] sm:$0xff] }
 0x40b   : > { %v1780_v44 = vmul.f32 %v3659_v35, %v3659_v35  ;;  %v1738_v55 = vpop.f32.mrf.mxu1  ;;  %v2018_v56 = vld [vmem:[#allocation10 + $0x58] sm:$0xff] }
 0x40c   : > { %v1782_v42 = vmul.f32 %v3661_v28, %v3661_v28  ;;  %v1698_v52 = vpop.f32.mrf.mxu0  ;;  %v2017_v55 = vld [vmem:[#allocation10 + $0x50] sm:$0xff] }
 0x40d   : > { %v1739_v59 = vpop.f32.mrf.mxu1  ;;  %2457 = vmatprep.mubr.msk.f32.mxu0 %vm1776_vm14, %v1780_v44  ;;  %v2020_v44 = vld [vmem:[#allocation10 + $0x68] sm:$0xff]  ;;  %v2016_v52 = vld [vmem:[#allocation10 + $0x40] sm:$0xff] }
 0x40e   : > { %2459 = vmatprep.mubr.msk.f32.mxu1 %vm1778_vm15, %v1782_v42  ;;  %2458 = vmatmul.mubr.msk.f32.vlgmr.msra.gmra.mxu0 %vm1775_vm0, %v1779_v32  ;;  %v2019_v32 = vld [vmem:[#allocation10 + $0x60] sm:$0xff]  ;;  %v2014_v42 = vld [vmem:[#allocation10 + $0x30] sm:$0xff]  ;;  %v2015_v59 = vld [vmem:[#allocation10 + $0x38] sm:$0xff] }
 0x40f   : > { %2460 = vmatmul.mubr.msk.f32.vlgmr.msra.gmra.mxu1 %vm1777_vm1, %v1781_v45  ;;  %2137 = vmatprep.mubr.f32.mxu0 %v3075_v47  ;;  %v2013_v45 = vld [vmem:[#allocation10 + $0x28] sm:$0xff] }
 0x410   : > { %2208 = vmatprep.mubr.f32.mxu1 %v3075_v47  ;;  %2074 = vmatpush1.msra.mxu0 %v2069_v33  ;;  %v2058_v47 = vld [vmem:[#allocation10 + $0x1e8] sm:$0xff]  ;;  %v2009_v33 = vld [vmem:[#allocation10] sm:$0xff] }
 0x411   : > { %2145 = vmatpush1.msra.mxu1 %v2071_v38  ;;  %2075 = vmatprep.subr.mxu0 %v2066_v53  ;;  %v2011_v38 = vld [vmem:[#allocation10 + $0x10] sm:$0xff] }
 0x412   : > { %2146 = vmatprep.subr.mxu1 %v2068_v31  ;;  %2076 = vmatpush1.msra.mxu0 %v2065_v46 }
 0x413   : > { %2147 = vmatpush1.msra.mxu1 %v2067_v43  ;;  %2077 = vmatprep.subr.mxu0 %v2062_v61 }
 0x414   : > { %2148 = vmatprep.subr.mxu1 %v2064_v25  ;;  %2078 = vmatpush1.msra.mxu0 %v2061_v58 }
 0x415   : > { %2149 = vmatpush1.msra.mxu1 %v2063_v40  ;;  %2079 = vmatprep.subr.mxu0 %v2058_v47 }
 0x416   : > { %2150 = vmatprep.subr.mxu1 %v2060_v57  ;;  %2080 = vmatpush1.msra.mxu0 %v2057_v54 }
 0x417   : > { %2151 = vmatpush1.msra.mxu1 %v2059_v10  ;;  %2081 = vmatprep.subr.mxu0 %v2054_v19 }
 0x418   : > { %2152 = vmatprep.subr.mxu1 %v2056_v21  ;;  %2082 = vmatpush1.msra.mxu0 %v2053_v16 }
 0x419   : > { %2153 = vmatpush1.msra.mxu1 %v2055_v1  ;;  %2083 = vmatprep.subr.mxu0 %v2050_v2 }
 0x41a   : > { %2154 = vmatprep.subr.mxu1 %v2052_v50  ;;  %2084 = vmatpush1.msra.mxu0 %v2049_v8 }
 0x41b   : > { %2155 = vmatpush1.msra.mxu1 %v2051_v62  ;;  %2085 = vmatprep.subr.mxu0 %v2046_v60 }
 0x41c   : > { %2156 = vmatprep.subr.mxu1 %v2048_v39  ;;  %2086 = vmatpush1.msra.mxu0 %v2045_v29 }
 0x41d   : > { %2157 = vmatpush1.msra.mxu1 %v2047_v30  ;;  %2087 = vmatprep.subr.mxu0 %v2042_v4 }
 0x41e   : > { %2158 = vmatprep.subr.mxu1 %v2044_v34  ;;  %2088 = vmatpush1.msra.mxu0 %v2041_v6 }
 0x41f   : > { %2159 = vmatpush1.msra.mxu1 %v2043_v13  ;;  %2089 = vmatprep.subr.mxu0 %v2038_v17 }
 0x420   : > { %2160 = vmatprep.subr.mxu1 %v2040_v41  ;;  %2090 = vmatpush1.msra.mxu0 %v2037_v18 }
 0x421   : > { %2161 = vmatpush1.msra.mxu1 %v2039_v23  ;;  %2091 = vmatprep.subr.mxu0 %v2034_v48 }
 0x422   : > { %2162 = vmatprep.subr.mxu1 %v2036_v12  ;;  %2092 = vmatpush1.msra.mxu0 %v2033_v11 }
 0x423   : > { %2163 = vmatpush1.msra.mxu1 %v2035_v3  ;;  %2093 = vmatprep.subr.mxu0 %v2030_v49 }
 0x424   : > { %2164 = vmatprep.subr.mxu1 %v2032_v27  ;;  %2094 = vmatpush1.msra.mxu0 %v2029_v9 }
 0x425   : > { %2165 = vmatpush1.msra.mxu1 %v2031_v63  ;;  %2095 = vmatprep.subr.mxu0 %v2026_v14 }
 0x426   : > { %2166 = vmatprep.subr.mxu1 %v2028_v51  ;;  %2096 = vmatpush1.msra.mxu0 %v2025_v5 }
 0x427   : > { %2167 = vmatpush1.msra.mxu1 %v2027_v37  ;;  %2097 = vmatprep.subr.mxu0 %v2022_v15 }
 0x428   : > { %2168 = vmatprep.subr.mxu1 %v2024_v7  ;;  %2098 = vmatpush1.msra.mxu0 %v2021_v0 }
 0x429   : > { %2169 = vmatpush1.msra.mxu1 %v2023_v24  ;;  %2099 = vmatprep.subr.mxu0 %v2018_v56 }
 0x42a   : > { %2170 = vmatprep.subr.mxu1 %v2020_v44  ;;  %2100 = vmatpush1.msra.mxu0 %v2017_v55 }
 0x42b   : > { %2171 = vmatpush1.msra.mxu1 %v2019_v32  ;;  %2101 = vmatprep.subr.mxu0 %v2014_v42 }
 0x42c   : > { %2172 = vmatprep.subr.mxu1 %v2016_v52  ;;  %2102 = vmatpush1.msra.mxu0 %v2013_v45 }
 0x42d   : > { %2173 = vmatpush1.msra.mxu1 %v2015_v59  ;;  %2103 = vmatprep.subr.mxu0 %v2010_v26 }
 0x42e   : > { %2174 = vmatprep.subr.mxu1 %v2012_v22  ;;  %2104 = vmatpush1.msra.mxu0 %v2009_v33 }
 0x42f   : > { %2175 = vmatpush1.msra.mxu1 %v2011_v38 }
 0x4ce   : > { %v2622_v53 = vpop.f32.mrf.mxu0 }
 0x4cf   : > { %v2657_v31 = vpop.f32.mrf.mxu1 }
 0x4d0   : > { %v2623_v46 = vpop.f32.mrf.mxu0 }
 0x4d1   : > { %v2624_v43 = vadd.f32 %v2623_v46, %v2622_v53  ;;  %v2658_v61 = vpop.f32.mrf.mxu1 }
 0x4d2   : > { %v2659_v25 = vadd.f32 %v2658_v61, %v2657_v31 }
 0x4d4   : > { %v1988_v58 = vadd.f32 %v2659_v25, %v2624_v43 }
 0x4d6   : > { %2854 = vrsqrt.f32 %v1988_v58  ;;  %vm1993_vm2 = vcmp.eq.f32.partialorder %v1988_v58, inf  ;;  %v1996_v57 = vand.u32 2147483648, %v1988_v58  ;;  %vm1995_vm3 = vcmp.eq.f32.partialorder %v1988_v58, 0.0 }
 0x4e3   : > { %v2855_v40 = vpop.eup %2854 }
 0x4e4   : > { %v1992_v47 = vmul.f32 %v2855_v40, %v1988_v58 }
 0x4e6   : > { %v1994_v54 = vsel %vm1993_vm2, %v1988_v58, %v1992_v47 }
 0x4e7   : > { %v1997_v10 = vsel %vm1995_vm3, %v1996_v57, %v1994_v54 }
 0x4e8   : > { %v1998_v19 = vmax.f32 %v1997_v10, 1e-15 }
 0x4ea   : > { %v2461_v21 = vclamps-f32 %v1998_v19, 15.0 }
 0x4ec   : > { %2856 = vtanh.f32 %v2461_v21 }
 0x4f9   : > { %v2857_v16 = vpop.eup %2856 }
 0x4fa   : > { %2858 = vrcp.f32 %v2857_v16  ;;  %vm2004_vm4 = vcmp.gt.f32.partialorder %v2857_v16, 0.996 }
 0x4fb   : > { %2860 = vrcp.f32 %v1998_v19 }
 0x507   : > { %v2859_v1 = vpop.eup %2858 }
 0x508   : > { %v2861_v2 = vpop.eup %2860  ;;  %v2006_v50 = vmul.f32 0.996, %v2859_v1 }
 0x509   : > { %v2003_v8 = vmul.f32 %v2861_v2, %v2857_v16 }
 0x50a   : > { %v2007_v62 = vsel %vm2004_vm4, %v2006_v50, 1.0 }
 0x50b   : > { %v2008_v60 = vmul.f32 %v2007_v62, %v2003_v8 }
 0x50d   : > { %2138 = vmatmul.mubr.f32.vlgmr.msra.gmra.mxu0 %v2008_v60  ;;  %2209 = vmatmul.mubr.f32.vlgmr.msra.gmra.mxu1 %v2008_v60 }
 0x5cd   : > { %v2139_v39 = vpop.f32.mrf.mxu0  ;;  %v2210_v29 = vpop.f32.mrf.mxu1 }
 0x5ce   : > { %v2215_v30 = vmul.f32 %v2139_v39, %v3655_v20  ;;  %v2217_v4 = vmul.f32 %v2210_v29, %v3657_v36 }
 0x5cf   : > { %v2141_v34 = vpop.f32.mrf.mxu0  ;;  %v2212_v6 = vpop.f32.mrf.mxu1 }
 0x5d0   : > { %2219 = vst [vmem:[%s404_s9] sm:$0xff] %v2215_v30  ;;  %2221 = vst [vmem:[%s404_s9 + $0x10] sm:$0xff] %v2217_v4  ;;  %v2216_v13 = vmul.f32 %v2141_v34, %v3659_v35  ;;  %v2218_v17 = vmul.f32 %v2212_v6, %v3661_v28 }
 0x5d2   : > { %2220 = vst [vmem:[%s404_s9 + $0x8] sm:$0xff] %v2216_v13  ;;  %2222 = vst [vmem:[%s404_s9 + $0x18] sm:$0xff] %v2218_v17 }
 0x5d3   : > { %2984 = shalt.err (!%p2981_p5)
}
 0x5d4   : > { %s2985_s17 = scalar_lea.hbm %s3682_s10, 512  ;;  %s2989_s15 = scalar_lea.hbm %s3777_s8, 1024 }
 0x5d5   : > { %p2986_p1 = scmp.ne.s32.totalorder %s3682_s10, %s2985_s17  ;;  %p2990_p2 = scmp.lt.s32.totalorder %s3682_s10, %s3777_s8 }
 0x5d6   : > { %p2991_p11 = scmp.lt.s32.totalorder %s2989_s15, %s2985_s17 }
 0x5d7   : > { %p2987_p3 = pnand %p2986_p1, %p3778_p8 }
 0x5d8   : > { %p2992_p9 = por %p2991_p11, %p2990_p2 }
 0x5d9   : > { %p2988_p12 = pneg %p2987_p3 }
 0x5db   : > { %p2993_p7 = pnand %p2992_p9, %p2988_p12 }
 0x5dd   : > { %2996 = shalt.err (!%p2993_p7)
}
 0x5de   : > { %2743 = dma.vmem_to_hbm [thread:$0]  (%p3778_p8), %s2241_s3, 512, %s3682_s10, %s2224_s27  }
 0x5df PF: > { %s3779_s4 = sld [smem:[#allocation18_spill]]  ;;  %p3782_p10 = scmp.ge.s32.totalorder %s3063_s26, 2 }
 0x5e0   : > { %s3780_s29 = sld [smem:[#allocation21_spill]] }
 0x5e5   : > { %s2252_s14 = sand.u32 1, %s3779_s4  }
 0x5e6   : > { %p3781_p0 = scmp.ne.s32.totalorder %s3780_s29, 0  ;;  %s2253_s20 = scalar_lea.sflag [#allocation6], %s2252_s14 }
 0x5e8   : > { %p2760_p6 = pnand %p3782_p10, %p3781_p0 }
 0x5ea   : > { %p2761_p13 = pneg %p2760_p6 }
 0x5ec   : > { %3038 = dma.done.wait (%p2761_p13), %s2253_s20, 512  }
 0x5ed   : > { %3040 = vsyncadd (%p2761_p13), %s2253_s20, 4294966784  ;;  %s26_s26 = sadd.s32 1, %s3063_s26   ;;  %s3783_s0 = sld [smem:[#allocation22_spill]] }
 0x5ee   : > { %p23_p4 = scmp.ge.s32.totalorder %s26_s26, 4   ;;  %s3784_s21 = smov %s3047_s22 }
 0x5ef   : > { %s3785_s22 = smov %s3051_s23  ;;  %s3786_s23 = smov %s3259_s30 }
 0x5f0   : > { %s3787_s24 = smov %s3059_s25  ;;  %25 = sbr.rel (!%p23_p4) target bundleno = 15 (0xf), region = 121 }
 0x5f3   : > { %s3788_s25 = smov %s3783_s0 }
 0x5f5   :  { %2258 = vsyncpa [#allocation5], 1 }
 0x5f6   :  { %2260 = vsyncpa [#allocation5 + $0x1], 1 }
 0x5f7   :  { %2261 = vsyncpa [#allocation8], 1 }
 0x5f8   :  { %2263 = vsyncpa [#allocation8 + $0x1], 1 }
 0x5f9   :  { %2264 = vsyncpa [#allocation11], 1 }
 0x5fa   :  { %2265 = vsyncpa [#allocation6], 1 }
 0x5fb   :  { %2267 = vsyncpa [#allocation6 + $0x1], 1 }

</bundles_post_ra>
